<compile_context>
chip_gen: v7x
topology: tpu7x:2x2x1
jax: 0.10.0
libtpu: 0.0.40
codegen_flags: <defaults>
</compile_context>

<pallas_src>
import numpy as np
import jax
import jax.numpy as jnp
from jax.experimental import pallas as pl
from jax.experimental.pallas import tpu as pltpu

LANE = 128   # TPU vreg lane width
SUB = 8      # TPU vreg sublane width (f32)


def _round_up(x, m):
    return (x + m - 1) // m * m


def _pad_axis(a, axis, new_size):
    pad = [(0, 0)] * a.ndim
    pad[axis] = (0, new_size - a.shape[axis])
    return jnp.pad(a, pad)


def _fold_bn(gamma, beta, mean, var, eps):
    scale = gamma / jnp.sqrt(var + eps)
    bias = beta - mean * scale
    return scale.astype(jnp.float32), bias.astype(jnp.float32)


def _vmem_limit_bytes():
    # v5e/v6e: 128 MiB physical VMEM -> allow large whole-image blocks.
    # v7x (and unknown): 64 MiB per TensorCore -> stay well under.
    try:
        kind = jax.devices()[0].device_kind.lower()
    except Exception:  # pragma: no cover
        kind = ""
    if "v5" in kind or "v6" in kind:
        return 96 * 1024 * 1024
    return 48 * 1024 * 1024


# ---------------------------------------------------------------------------
# Fused bottleneck kernel: one image per grid step.
#
# Input x is pre-arranged in the wrapper as (sw, H, Wo, Cin_p): channels on
# the lane axis, columns phase-grouped by (w % sw, w // sw) so that conv_1's
# column stride becomes a *contiguous* slice of the halo buffer; the row
# stride is handled with a leading-dim reshape (no strided vector ops).
# ---------------------------------------------------------------------------
def _make_kernel(*, H, W, Ho, Wo, sh, sw, use_projection):

    def kernel(*refs):
        if use_projection:
            (x_ref, xs_ref, w0_ref, b0_ref, w1_ref, b1_ref,
             w2_ref, b2_ref, wp_ref, bp_ref, o_ref, h0_scr) = refs
        else:
            (x_ref, xs_ref, w0_ref, b0_ref, w1_ref, b1_ref,
             w2_ref, b2_ref, o_ref, h0_scr) = refs
            wp_ref = bp_ref = None

        c4p = w0_ref.shape[-1]

        # --- conv_0 (1x1) + BN + ReLU, interior pixels only ----------------
        h0 = jnp.dot(x_ref[...], w0_ref[...],
                     preferred_element_type=jnp.float32)
        h0 = jnp.maximum(h0 + b0_ref[...], 0.0).astype(jnp.bfloat16)  # 1 cast
        h0 = h0.reshape(sw, H, Wo, c4p)            # (phase, row, q, c)

        # --- scatter h0 into the zeroed, phase-grouped halo buffer ---------
        # scratch persists across grid steps -> re-zero every step so the
        # halo (and any never-written slot) never leaks stale data.
        h0_scr[...] = jnp.zeros_like(h0_scr)
        for p in range(sw):
            cols = (W - p + sw - 1) // sw          # valid q slots, phase p
            h0_scr[p, 1:H + 1, 1:cols + 1, :] = h0[p, :, :cols, :]

        # --- 3x3 conv_1 at stride (sh, sw) + BN + ReLU ----------------------
        # Column stride: free (phase-grouped layout -> contiguous q slice).
        # Row stride: contiguous row slab + leading-dim reshape + select.
        # Taps contracted in 3 groups of 3 (K = 3*c4p) accumulated in f32.
        acc = None
        for kh in range(3):
            taps = []
            for kw in range(3):
                a = kw - 1
                p = a % sw
                q0 = (a - p) // sw + 1             # scratch column start
                t = h0_scr[p, kh:kh + Ho * sh, q0:q0 + Wo, :]
                if sh > 1:
                    t = t.reshape(Ho, sh, Wo, c4p)[:, 0]
                taps.append(t)
            grp = jnp.concatenate(taps, axis=-1).reshape(Ho * Wo, 3 * c4p)
            part = jnp.dot(grp, w1_ref[kh * 3 * c4p:(kh + 1) * 3 * c4p, :],
                           preferred_element_type=jnp.float32)
            acc = part if acc is None else acc + part
        h1 = jnp.maximum(acc + b1_ref[...], 0.0).astype(jnp.bfloat16)

        # --- conv_2 (1x1) + BN + shortcut + residual add + ReLU -------------
        y = jnp.dot(h1, w2_ref[...],
                    preferred_element_type=jnp.float32) + b2_ref[...]
        if use_projection:
            sc = jnp.dot(xs_ref[...], wp_ref[...],
                         preferred_element_type=jnp.float32) + bp_ref[...]
        else:
            sc = xs_ref[...].astype(jnp.float32)
        o_ref[...] = jnp.maximum(y + sc, 0.0).astype(o_ref.dtype)

    return kernel


# ---------------------------------------------------------------------------
# Parameter init (deterministic, shapes follow the PyTorch module __init__)
# ---------------------------------------------------------------------------
def init_params(key, in_channels, channels, use_projection):
    c4 = channels // 4
    ks = jax.random.split(key, 8)

    def conv_w(k, cout, cin, kh, kw):
        fan_in = cin * kh * kw
        return (jax.random.normal(k, (cout, cin, kh, kw), jnp.float32)
                / np.sqrt(fan_in))

    def bn_p(k, c):
        k1, k2, k3, k4 = jax.random.split(k, 4)
        gamma = 1.0 + 0.1 * jax.random.normal(k1, (c,), jnp.float32)
        beta = 0.1 * jax.random.normal(k2, (c,), jnp.float32)
        mean = 0.1 * jax.random.normal(k3, (c,), jnp.float32)
        var = 0.5 + jax.random.uniform(k4, (c,), jnp.float32)
        return gamma, beta, mean, var

    params = {
        "w0": conv_w(ks[0], c4, in_channels, 1, 1),
        "bn0": bn_p(ks[1], c4),
        "w1": conv_w(ks[2], c4, c4, 3, 3),
        "bn1": bn_p(ks[3], c4),
        "w2": conv_w(ks[4], channels, c4, 1, 1),
        "bn2": bn_p(ks[5], channels),
    }
    if use_projection:
        params["wp"] = conv_w(ks[6], channels, in_channels, 1, 1)
        params["bnp"] = bn_p(ks[7], channels)
    return params


# ---------------------------------------------------------------------------
# Forward pass (Pallas)
# ---------------------------------------------------------------------------
def bottleneck_block_v1(params, x_nchw, *, stride, use_projection, eps=1e-5):
    N, Cin, H, W = x_nchw.shape
    c4 = params["w0"].shape[0]
    C = params["w2"].shape[0]
    sh, sw = (tuple(stride) if isinstance(stride, (tuple, list))
              else (stride, stride))
    Ho = (H - 1) // sh + 1
    Wo = (W - 1) // sw + 1

    Cin_p = _round_up(Cin, LANE)
    c4_p = _round_up(c4, LANE)
    C_p = _round_up(C, LANE)

    # Fold inference-mode BN: scale -> into the conv weights, bias stays f32.
    s0, b0 = _fold_bn(*params["bn0"], eps)
    s1, b1 = _fold_bn(*params["bn1"], eps)
    s2, b2 = _fold_bn(*params["bn2"], eps)

    w0 = params["w0"].reshape(c4, Cin).T * s0[None, :]                      # (Cin, c4)
    w1 = jnp.transpose(params["w1"], (2, 3, 1, 0)) * s1[None, None, None, :]  # (3,3,ci,co)
    w2 = params["w2"].reshape(C, c4).T * s2[None, :]                        # (c4, C)

    w0p = _pad_axis(_pad_axis(w0, 0, Cin_p), 1, c4_p).astype(jnp.bfloat16)
    w1p = (_pad_axis(_pad_axis(w1, 2, c4_p), 3, c4_p)                       # K=(kh,kw,ci)
           .reshape(9 * c4_p, c4_p).astype(jnp.bfloat16))
    w2p = _pad_axis(_pad_axis(w2, 0, c4_p), 1, C_p).astype(jnp.bfloat16)
    b0p = _pad_axis(b0.reshape(1, -1), 1, c4_p)
    b1p = _pad_axis(b1.reshape(1, -1), 1, c4_p)
    b2p = _pad_axis(b2.reshape(1, -1), 1, C_p)

    # NCHW -> (N, sw, H, Wo, Cin_p) bf16: channels lane-dense, columns
    # phase-grouped so conv_1's column stride is a contiguous slice in-kernel.
    x_nhwc = jnp.transpose(x_nchw, (0, 2, 3, 1)).astype(jnp.float32)
    x_g = jnp.pad(x_nhwc,
                  ((0, 0), (0, 0), (0, Wo * sw - W), (0, Cin_p - Cin)))
    x_g = x_g.reshape(N, H, Wo, sw, Cin_p)
    x_g = jnp.transpose(x_g, (0, 3, 1, 2, 4)).astype(jnp.bfloat16)
    x_g = x_g.reshape(N, sw * H * Wo, Cin_p)

    # Shortcut input: strided subsample of x (lane-padded, bf16).
    xs = x_nhwc[:, ::sh, ::sw, :]
    if use_projection:
        sp, bp = _fold_bn(*params["bnp"], eps)
        wp = params["wp"].reshape(C, Cin).T * sp[None, :]
        wpp = _pad_axis(_pad_axis(wp, 0, Cin_p), 1, C_p).astype(jnp.bfloat16)
        bpp = _pad_axis(bp.reshape(1, -1), 1, C_p)
        xs_c = Cin_p
    else:
        if Cin != C:
            raise ValueError("identity shortcut requires in_channels == channels")
        wpp = bpp = None
        xs_c = C_p
    xs_p = _pad_axis(xs.reshape(N, Ho * Wo, Cin), 2, xs_c).astype(jnp.bfloat16)

    kernel = _make_kernel(H=H, W=W, Ho=Ho, Wo=Wo, sh=sh, sw=sw,
                          use_projection=use_projection)

    Hp = Ho * sh + 2                       # halo rows (covers row over-run)
    Wqp = _round_up(Wo + 2, SUB)           # halo + sublane-aligned columns

    # Grid-invariant weight/bias blocks: at these sizes default double
    # buffering costs little; on v7x at the largest stages they could be
    # single-buffered via pipeline_mode=pl.Buffered(1) for extra headroom.
    in_specs = [
        pl.BlockSpec((None, sw * H * Wo, Cin_p), lambda n: (n, 0, 0)),
        pl.BlockSpec((None, Ho * Wo, xs_c), lambda n: (n, 0, 0)),
        pl.BlockSpec((Cin_p, c4_p), lambda n: (0, 0)),
        pl.BlockSpec((1, c4_p), lambda n: (0, 0)),
        pl.BlockSpec((9 * c4_p, c4_p), lambda n: (0, 0)),
        pl.BlockSpec((1, c4_p), lambda n: (0, 0)),
        pl.BlockSpec((c4_p, C_p), lambda n: (0, 0)),
        pl.BlockSpec((1, C_p), lambda n: (0, 0)),
    ]
    args = [x_g, xs_p, w0p, b0p, w1p, b1p, w2p, b2p]
    if use_projection:
        in_specs += [pl.BlockSpec((Cin_p, C_p), lambda n: (0, 0)),
                     pl.BlockSpec((1, C_p), lambda n: (0, 0))]
        args += [wpp, bpp]

    out = pl.pallas_call(
        kernel,
        out_shape=jax.ShapeDtypeStruct((N, Ho * Wo, C_p), jnp.bfloat16),
        grid=(N,),
        in_specs=in_specs,
        out_specs=pl.BlockSpec((None, Ho * Wo, C_p), lambda n: (n, 0, 0)),
        scratch_shapes=[pltpu.VMEM((sw, Hp, Wqp, c4_p), jnp.bfloat16)],
        compiler_params=pltpu.CompilerParams(
            dimension_semantics=("parallel",),
            vmem_limit_bytes=_vmem_limit_bytes(),
        ),
    )(*args)

    out = out.reshape(N, Ho, Wo, C_p)[:, :, :, :C]
    return jnp.transpose(out, (0, 3, 1, 2)).astype(jnp.float32)   # NCHW f32


# ---------------------------------------------------------------------------
# Pure-JAX reference (correctness check only)
# ---------------------------------------------------------------------------
def bottleneck_block_v1_reference(params, x, *, stride, use_projection, eps=1e-5):
    strides = tuple(stride) if isinstance(stride, (tuple, list)) else (stride, stride)

    def conv(x, w, strides, padding):
        return jax.lax.conv_general_dilated(
            x, w, window_strides=strides, padding=padding,
            dimension_numbers=("NCHW", "OIHW", "NCHW"))

    def bn(x, p):
        g, b, m, v = p
        sc = (g / jnp.sqrt(v + eps))[None, :, None, None]
        return (x - m[None, :, None, None]) * sc + b[None, :, None, None]

    if use_projection:
        shortcut = bn(conv(x, params["wp"], strides, "VALID"), params["bnp"])
    else:
        shortcut = x
    h = jax.nn.relu(bn(conv(x, params["w0"], (1, 1), "VALID"), params["bn0"]))
    h = jax.nn.relu(bn(conv(h, params["w1"], strides, [(1, 1), (1, 1)]),
                       params["bn1"]))
    h = bn(conv(h, params["w2"], (1, 1), "VALID"), params["bn2"])
    return jax.nn.relu(h + shortcut)


def _check(params, x, stride, use_projection, eps):
    out = jax.block_until_ready(
        bottleneck_block_v1(params, x, stride=stride,
                            use_projection=use_projection, eps=eps))
    ref = jax.block_until_ready(
        bottleneck_block_v1_reference(params, x, stride=stride,
                                      use_projection=use_projection, eps=eps))
    assert out.shape == ref.shape, (out.shape, ref.shape)
    a, b = np.asarray(out), np.asarray(ref)
    # bf16 MXU operands / bf16 output (f32 accumulation) -> loose tolerance.
    if not np.allclose(a, b, rtol=5e-2, atol=5e-2):
        raise AssertionError(
            f"Pallas/reference mismatch, max abs err = {np.max(np.abs(a - b))}")


if __name__ == "__main__":
    key = jax.random.PRNGKey(0)
    k1, k2, kx1, kx2 = jax.random.split(key, 4)
    eps = 1e-5

    # Case 1: projection shortcut, stride 2 (downsampling block).
    N, Cin, H, W = 2, 16, 16, 16
    channels = 32
    params = init_params(k1, Cin, channels, True)
    x = jax.random.normal(kx1, (N, Cin, H, W), jnp.float32)
    _check(params, x, stride=2, use_projection=True, eps=eps)

    # Case 2: identity shortcut, stride 1.
    params2 = init_params(k2, channels, channels, False)
    x2 = jax.random.normal(kx2, (N, channels, H, W), jnp.float32)
    _check(params2, x2, stride=1, use_projection=False, eps=eps)

    print("KERNEL_OK")
</pallas_src>

<mosaic_0001>
module attributes {stable_mosaic.version = 11 : i64} {
  func.func @kernel(%arg0: i32, %arg1: memref<1x256x128xbf16, #tpu.memory_space<vmem>>, %arg2: memref<1x64x128xbf16, #tpu.memory_space<vmem>>, %arg3: memref<128x128xbf16, #tpu.memory_space<vmem>>, %arg4: memref<1x128xf32, #tpu.memory_space<vmem>>, %arg5: memref<1152x128xbf16, #tpu.memory_space<vmem>>, %arg6: memref<1x128xf32, #tpu.memory_space<vmem>>, %arg7: memref<128x128xbf16, #tpu.memory_space<vmem>>, %arg8: memref<1x128xf32, #tpu.memory_space<vmem>>, %arg9: memref<128x128xbf16, #tpu.memory_space<vmem>>, %arg10: memref<1x128xf32, #tpu.memory_space<vmem>>, %arg11: memref<1x64x128xbf16, #tpu.memory_space<vmem>>, %arg12: memref<2x18x16x128xbf16, #tpu.memory_space<vmem>>) attributes {dimension_semantics = [#tpu.dimension_semantics<parallel>], iteration_bounds = array<i64: 2>, scalar_prefetch = 0 : i64, scratch_operands = 1 : i64, tpu.core_type = #tpu.core_type<tc>, window_params = [{transform_indices = @transform_0, window_bounds = array<i64: 1, 256, 128>}, {transform_indices = @transform_1, window_bounds = array<i64: 1, 64, 128>}, {pipeline_mode = #tpu.pipeline_mode<synchronous>, transform_indices = @transform_2, window_bounds = array<i64: 128, 128>}, {pipeline_mode = #tpu.pipeline_mode<synchronous>, transform_indices = @transform_3, window_bounds = array<i64: 1, 128>}, {pipeline_mode = #tpu.pipeline_mode<synchronous>, transform_indices = @transform_4, window_bounds = array<i64: 1152, 128>}, {pipeline_mode = #tpu.pipeline_mode<synchronous>, transform_indices = @transform_5, window_bounds = array<i64: 1, 128>}, {pipeline_mode = #tpu.pipeline_mode<synchronous>, transform_indices = @transform_6, window_bounds = array<i64: 128, 128>}, {pipeline_mode = #tpu.pipeline_mode<synchronous>, transform_indices = @transform_7, window_bounds = array<i64: 1, 128>}, {pipeline_mode = #tpu.pipeline_mode<synchronous>, transform_indices = @transform_8, window_bounds = array<i64: 128, 128>}, {pipeline_mode = #tpu.pipeline_mode<synchronous>, transform_indices = @transform_9, window_bounds = array<i64: 1, 128>}, {transform_indices = @transform_10, window_bounds = array<i64: 1, 64, 128>}]} {
    %c0 = arith.constant 0 : index
    %c0_0 = arith.constant 0 : index
    %c0_1 = arith.constant 0 : index
    %0 = vector.load %arg1[%c0, %c0_0, %c0_1] : memref<1x256x128xbf16, #tpu.memory_space<vmem>>, vector<1x256x128xbf16>
    %1 = vector.shape_cast %0 : vector<1x256x128xbf16> to vector<256x128xbf16>
    %c0_2 = arith.constant 0 : index
    %c0_3 = arith.constant 0 : index
    %2 = vector.load %arg3[%c0_2, %c0_3] : memref<128x128xbf16, #tpu.memory_space<vmem>>, vector<128x128xbf16>
    %cst = arith.constant dense<0.000000e+00> : vector<256x128xf32>
    %3 = tpu.matmul %1, %2, %cst {dimension_numbers = #tpu.dot_dimension_numbers<[1], [0], [0], [1], [0, 0, 1, 1], [], []>} : vector<256x128xbf16>, vector<128x128xbf16>, vector<256x128xf32> -> vector<256x128xf32>
    %c0_4 = arith.constant 0 : index
    %c0_5 = arith.constant 0 : index
    %4 = vector.load %arg4[%c0_4, %c0_5] : memref<1x128xf32, #tpu.memory_space<vmem>>, vector<1x128xf32>
    %5 = vector.broadcast %4 : vector<1x128xf32> to vector<256x128xf32>
    %6 = arith.addf %3, %5 : vector<256x128xf32>
    %cst_6 = arith.constant 0.000000e+00 : f32
    %7 = vector.broadcast %cst_6 : f32 to vector<256x128xf32>
    %8 = arith.maximumf %6, %7 : vector<256x128xf32>
    %9 = arith.truncf %8 : vector<256x128xf32> to vector<256x128xbf16>
    %10 = vector.shape_cast %9 : vector<256x128xbf16> to vector<2x16x8x128xbf16>
    %cst_7 = arith.constant 0.000000e+00 : bf16
    %11 = vector.broadcast %cst_7 : bf16 to vector<2x18x16x128xbf16>
    %c0_8 = arith.constant 0 : index
    %c0_9 = arith.constant 0 : index
    %c0_10 = arith.constant 0 : index
    %c0_11 = arith.constant 0 : index
    %12 = vector.load %arg12[%c0_8, %c0_9, %c0_10, %c0_11] : memref<2x18x16x128xbf16, #tpu.memory_space<vmem>>, vector<2x18x16x128xbf16>
    tpu.vector_store %arg12[%c0_8, %c0_9, %c0_10, %c0_11], %11 {strides = array<i32>} : memref<2x18x16x128xbf16, #tpu.memory_space<vmem>>, vector<2x18x16x128xbf16>,
    %13 = vector.extract_strided_slice %10 {offsets = [0, 0, 0, 0], sizes = [1, 16, 8, 128], strides = [1, 1, 1, 1]} : vector<2x16x8x128xbf16> to vector<1x16x8x128xbf16>
    %14 = vector.shape_cast %13 : vector<1x16x8x128xbf16> to vector<16x8x128xbf16>
    %c0_12 = arith.constant 0 : index
    %c1 = arith.constant 1 : index
    %c1_13 = arith.constant 1 : index
    %c0_14 = arith.constant 0 : index
    %15 = vector.load %arg12[%c0_12, %c1, %c1_13, %c0_14] : memref<2x18x16x128xbf16, #tpu.memory_space<vmem>>, vector<1x16x8x128xbf16>
    %16 = vector.shape_cast %15 : vector<1x16x8x128xbf16> to vector<16x8x128xbf16>
    %17 = vector.shape_cast %14 : vector<16x8x128xbf16> to vector<1x16x8x128xbf16>
    tpu.vector_store %arg12[%c0_12, %c1, %c1_13, %c0_14], %17 {strides = array<i32>} : memref<2x18x16x128xbf16, #tpu.memory_space<vmem>>, vector<1x16x8x128xbf16>,
    %18 = vector.extract_strided_slice %10 {offsets = [1, 0, 0, 0], sizes = [1, 16, 8, 128], strides = [1, 1, 1, 1]} : vector<2x16x8x128xbf16> to vector<1x16x8x128xbf16>
    %19 = vector.shape_cast %18 : vector<1x16x8x128xbf16> to vector<16x8x128xbf16>
    %c1_15 = arith.constant 1 : index
    %c1_16 = arith.constant 1 : index
    %c1_17 = arith.constant 1 : index
    %c0_18 = arith.constant 0 : index
    %20 = vector.load %arg12[%c1_15, %c1_16, %c1_17, %c0_18] : memref<2x18x16x128xbf16, #tpu.memory_space<vmem>>, vector<1x16x8x128xbf16>
    %21 = vector.shape_cast %20 : vector<1x16x8x128xbf16> to vector<16x8x128xbf16>
    %22 = vector.shape_cast %19 : vector<16x8x128xbf16> to vector<1x16x8x128xbf16>
    tpu.vector_store %arg12[%c1_15, %c1_16, %c1_17, %c0_18], %22 {strides = array<i32>} : memref<2x18x16x128xbf16, #tpu.memory_space<vmem>>, vector<1x16x8x128xbf16>,
    %c1_19 = arith.constant 1 : index
    %c0_20 = arith.constant 0 : index
    %c0_21 = arith.constant 0 : index
    %c0_22 = arith.constant 0 : index
    %23 = vector.load %arg12[%c1_19, %c0_20, %c0_21, %c0_22] : memref<2x18x16x128xbf16, #tpu.memory_space<vmem>>, vector<1x16x8x128xbf16>
    %24 = vector.shape_cast %23 : vector<1x16x8x128xbf16> to vector<16x8x128xbf16>
    %25 = vector.shape_cast %24 : vector<16x8x128xbf16> to vector<8x2x8x128xbf16>
    %26 = vector.extract_strided_slice %25 {offsets = [0, 0, 0, 0], sizes = [8, 1, 8, 128], strides = [1, 1, 1, 1]} : vector<8x2x8x128xbf16> to vector<8x1x8x128xbf16>
    %27 = vector.shape_cast %26 : vector<8x1x8x128xbf16> to vector<8x8x128xbf16>
    %c0_23 = arith.constant 0 : index
    %c0_24 = arith.constant 0 : index
    %c1_25 = arith.constant 1 : index
    %c0_26 = arith.constant 0 : index
    %28 = vector.load %arg12[%c0_23, %c0_24, %c1_25, %c0_26] : memref<2x18x16x128xbf16, #tpu.memory_space<vmem>>, vector<1x16x8x128xbf16>
    %29 = vector.shape_cast %28 : vector<1x16x8x128xbf16> to vector<16x8x128xbf16>
    %30 = vector.shape_cast %29 : vector<16x8x128xbf16> to vector<8x2x8x128xbf16>
    %31 = vector.extract_strided_slice %30 {offsets = [0, 0, 0, 0], sizes = [8, 1, 8, 128], strides = [1, 1, 1, 1]} : vector<8x2x8x128xbf16> to vector<8x1x8x128xbf16>
    %32 = vector.shape_cast %31 : vector<8x1x8x128xbf16> to vector<8x8x128xbf16>
    %c1_27 = arith.constant 1 : index
    %c0_28 = arith.constant 0 : index
    %c1_29 = arith.constant 1 : index
    %c0_30 = arith.constant 0 : index
    %33 = vector.load %arg12[%c1_27, %c0_28, %c1_29, %c0_30] : memref<2x18x16x128xbf16, #tpu.memory_space<vmem>>, vector<1x16x8x128xbf16>
    %34 = vector.shape_cast %33 : vector<1x16x8x128xbf16> to vector<16x8x128xbf16>
    %35 = vector.shape_cast %34 : vector<16x8x128xbf16> to vector<8x2x8x128xbf16>
    %36 = vector.extract_strided_slice %35 {offsets = [0, 0, 0, 0], sizes = [8, 1, 8, 128], strides = [1, 1, 1, 1]} : vector<8x2x8x128xbf16> to vector<8x1x8x128xbf16>
    %37 = vector.shape_cast %36 : vector<8x1x8x128xbf16> to vector<8x8x128xbf16>
    %38 = tpu.concatenate %27, %32, %37 in 2 : vector<8x8x128xbf16>, vector<8x8x128xbf16>, vector<8x8x128xbf16> -> vector<8x8x384xbf16>
    %39 = vector.shape_cast %38 : vector<8x8x384xbf16> to vector<64x384xbf16>
    %c0_31 = arith.constant 0 : index
    %c0_32 = arith.constant 0 : index
    %40 = vector.load %arg5[%c0_31, %c0_32] : memref<1152x128xbf16, #tpu.memory_space<vmem>>, vector<384x128xbf16>
    %cst_33 = arith.constant dense<0.000000e+00> : vector<64x128xf32>
    %41 = tpu.matmul %39, %40, %cst_33 {dimension_numbers = #tpu.dot_dimension_numbers<[1], [0], [0], [1], [0, 0, 1, 1], [], []>} : vector<64x384xbf16>, vector<384x128xbf16>, vector<64x128xf32> -> vector<64x128xf32>
    %c1_34 = arith.constant 1 : index
    %c1_35 = arith.constant 1 : index
    %c0_36 = arith.constant 0 : index
    %c0_37 = arith.constant 0 : index
    %42 = vector.load %arg12[%c1_34, %c1_35, %c0_36, %c0_37] : memref<2x18x16x128xbf16, #tpu.memory_space<vmem>>, vector<1x16x8x128xbf16>
    %43 = vector.shape_cast %42 : vector<1x16x8x128xbf16> to vector<16x8x128xbf16>
    %44 = vector.shape_cast %43 : vector<16x8x128xbf16> to vector<8x2x8x128xbf16>
    %45 = vector.extract_strided_slice %44 {offsets = [0, 0, 0, 0], sizes = [8, 1, 8, 128], strides = [1, 1, 1, 1]} : vector<8x2x8x128xbf16> to vector<8x1x8x128xbf16>
    %46 = vector.shape_cast %45 : vector<8x1x8x128xbf16> to vector<8x8x128xbf16>
    %c0_38 = arith.constant 0 : index
    %c1_39 = arith.constant 1 : index
    %c1_40 = arith.constant 1 : index
    %c0_41 = arith.constant 0 : index
    %47 = vector.load %arg12[%c0_38, %c1_39, %c1_40, %c0_41] : memref<2x18x16x128xbf16, #tpu.memory_space<vmem>>, vector<1x16x8x128xbf16>
    %48 = vector.shape_cast %47 : vector<1x16x8x128xbf16> to vector<16x8x128xbf16>
    %49 = vector.shape_cast %48 : vector<16x8x128xbf16> to vector<8x2x8x128xbf16>
    %50 = vector.extract_strided_slice %49 {offsets = [0, 0, 0, 0], sizes = [8, 1, 8, 128], strides = [1, 1, 1, 1]} : vector<8x2x8x128xbf16> to vector<8x1x8x128xbf16>
    %51 = vector.shape_cast %50 : vector<8x1x8x128xbf16> to vector<8x8x128xbf16>
    %c1_42 = arith.constant 1 : index
    %c1_43 = arith.constant 1 : index
    %c1_44 = arith.constant 1 : index
    %c0_45 = arith.constant 0 : index
    %52 = vector.load %arg12[%c1_42, %c1_43, %c1_44, %c0_45] : memref<2x18x16x128xbf16, #tpu.memory_space<vmem>>, vector<1x16x8x128xbf16>
    %53 = vector.shape_cast %52 : vector<1x16x8x128xbf16> to vector<16x8x128xbf16>
    %54 = vector.shape_cast %53 : vector<16x8x128xbf16> to vector<8x2x8x128xbf16>
    %55 = vector.extract_strided_slice %54 {offsets = [0, 0, 0, 0], sizes = [8, 1, 8, 128], strides = [1, 1, 1, 1]} : vector<8x2x8x128xbf16> to vector<8x1x8x128xbf16>
    %56 = vector.shape_cast %55 : vector<8x1x8x128xbf16> to vector<8x8x128xbf16>
    %57 = tpu.concatenate %46, %51, %56 in 2 : vector<8x8x128xbf16>, vector<8x8x128xbf16>, vector<8x8x128xbf16> -> vector<8x8x384xbf16>
    %58 = vector.shape_cast %57 : vector<8x8x384xbf16> to vector<64x384xbf16>
    %c384 = arith.constant 384 : index
    %c0_46 = arith.constant 0 : index
    %59 = vector.load %arg5[%c384, %c0_46] : memref<1152x128xbf16, #tpu.memory_space<vmem>>, vector<384x128xbf16>
    %cst_47 = arith.constant dense<0.000000e+00> : vector<64x128xf32>
    %60 = tpu.matmul %58, %59, %cst_47 {dimension_numbers = #tpu.dot_dimension_numbers<[1], [0], [0], [1], [0, 0, 1, 1], [], []>} : vector<64x384xbf16>, vector<384x128xbf16>, vector<64x128xf32> -> vector<64x128xf32>
    %61 = arith.addf %41, %60 : vector<64x128xf32>
    %c1_48 = arith.constant 1 : index
    %c2 = arith.constant 2 : index
    %c0_49 = arith.constant 0 : index
    %c0_50 = arith.constant 0 : index
    %62 = vector.load %arg12[%c1_48, %c2, %c0_49, %c0_50] : memref<2x18x16x128xbf16, #tpu.memory_space<vmem>>, vector<1x16x8x128xbf16>
    %63 = vector.shape_cast %62 : vector<1x16x8x128xbf16> to vector<16x8x128xbf16>
    %64 = vector.shape_cast %63 : vector<16x8x128xbf16> to vector<8x2x8x128xbf16>
    %65 = vector.extract_strided_slice %64 {offsets = [0, 0, 0, 0], sizes = [8, 1, 8, 128], strides = [1, 1, 1, 1]} : vector<8x2x8x128xbf16> to vector<8x1x8x128xbf16>
    %66 = vector.shape_cast %65 : vector<8x1x8x128xbf16> to vector<8x8x128xbf16>
    %c0_51 = arith.constant 0 : index
    %c2_52 = arith.constant 2 : index
    %c1_53 = arith.constant 1 : index
    %c0_54 = arith.constant 0 : index
    %67 = vector.load %arg12[%c0_51, %c2_52, %c1_53, %c0_54] : memref<2x18x16x128xbf16, #tpu.memory_space<vmem>>, vector<1x16x8x128xbf16>
    %68 = vector.shape_cast %67 : vector<1x16x8x128xbf16> to vector<16x8x128xbf16>
    %69 = vector.shape_cast %68 : vector<16x8x128xbf16> to vector<8x2x8x128xbf16>
    %70 = vector.extract_strided_slice %69 {offsets = [0, 0, 0, 0], sizes = [8, 1, 8, 128], strides = [1, 1, 1, 1]} : vector<8x2x8x128xbf16> to vector<8x1x8x128xbf16>
    %71 = vector.shape_cast %70 : vector<8x1x8x128xbf16> to vector<8x8x128xbf16>
    %c1_55 = arith.constant 1 : index
    %c2_56 = arith.constant 2 : index
    %c1_57 = arith.constant 1 : index
    %c0_58 = arith.constant 0 : index
    %72 = vector.load %arg12[%c1_55, %c2_56, %c1_57, %c0_58] : memref<2x18x16x128xbf16, #tpu.memory_space<vmem>>, vector<1x16x8x128xbf16>
    %73 = vector.shape_cast %72 : vector<1x16x8x128xbf16> to vector<16x8x128xbf16>
    %74 = vector.shape_cast %73 : vector<16x8x128xbf16> to vector<8x2x8x128xbf16>
    %75 = vector.extract_strided_slice %74 {offsets = [0, 0, 0, 0], sizes = [8, 1, 8, 128], strides = [1, 1, 1, 1]} : vector<8x2x8x128xbf16> to vector<8x1x8x128xbf16>
    %76 = vector.shape_cast %75 : vector<8x1x8x128xbf16> to vector<8x8x128xbf16>
    %77 = tpu.concatenate %66, %71, %76 in 2 : vector<8x8x128xbf16>, vector<8x8x128xbf16>, vector<8x8x128xbf16> -> vector<8x8x384xbf16>
    %78 = vector.shape_cast %77 : vector<8x8x384xbf16> to vector<64x384xbf16>
    %c768 = arith.constant 768 : index
    %c0_59 = arith.constant 0 : index
    %79 = vector.load %arg5[%c768, %c0_59] : memref<1152x128xbf16, #tpu.memory_space<vmem>>, vector<384x128xbf16>
    %cst_60 = arith.constant dense<0.000000e+00> : vector<64x128xf32>
    %80 = tpu.matmul %78, %79, %cst_60 {dimension_numbers = #tpu.dot_dimension_numbers<[1], [0], [0], [1], [0, 0, 1, 1], [], []>} : vector<64x384xbf16>, vector<384x128xbf16>, vector<64x128xf32> -> vector<64x128xf32>
    %81 = arith.addf %61, %80 : vector<64x128xf32>
    %c0_61 = arith.constant 0 : index
    %c0_62 = arith.constant 0 : index
    %82 = vector.load %arg6[%c0_61, %c0_62] : memref<1x128xf32, #tpu.memory_space<vmem>>, vector<1x128xf32>
    %83 = vector.broadcast %82 : vector<1x128xf32> to vector<64x128xf32>
    %84 = arith.addf %81, %83 : vector<64x128xf32>
    %cst_63 = arith.constant 0.000000e+00 : f32
    %85 = vector.broadcast %cst_63 : f32 to vector<64x128xf32>
    %86 = arith.maximumf %84, %85 : vector<64x128xf32>
    %87 = arith.truncf %86 : vector<64x128xf32> to vector<64x128xbf16>
    %c0_64 = arith.constant 0 : index
    %c0_65 = arith.constant 0 : index
    %88 = vector.load %arg7[%c0_64, %c0_65] : memref<128x128xbf16, #tpu.memory_space<vmem>>, vector<128x128xbf16>
    %cst_66 = arith.constant dense<0.000000e+00> : vector<64x128xf32>
    %89 = tpu.matmul %87, %88, %cst_66 {dimension_numbers = #tpu.dot_dimension_numbers<[1], [0], [0], [1], [0, 0, 1, 1], [], []>} : vector<64x128xbf16>, vector<128x128xbf16>, vector<64x128xf32> -> vector<64x128xf32>
    %c0_67 = arith.constant 0 : index
    %c0_68 = arith.constant 0 : index
    %90 = vector.load %arg8[%c0_67, %c0_68] : memref<1x128xf32, #tpu.memory_space<vmem>>, vector<1x128xf32>
    %91 = vector.broadcast %90 : vector<1x128xf32> to vector<64x128xf32>
    %92 = arith.addf %89, %91 : vector<64x128xf32>
    %c0_69 = arith.constant 0 : index
    %c0_70 = arith.constant 0 : index
    %c0_71 = arith.constant 0 : index
    %93 = vector.load %arg2[%c0_69, %c0_70, %c0_71] : memref<1x64x128xbf16, #tpu.memory_space<vmem>>, vector<1x64x128xbf16>
    %94 = vector.shape_cast %93 : vector<1x64x128xbf16> to vector<64x128xbf16>
    %c0_72 = arith.constant 0 : index
    %c0_73 = arith.constant 0 : index
    %95 = vector.load %arg9[%c0_72, %c0_73] : memref<128x128xbf16, #tpu.memory_space<vmem>>, vector<128x128xbf16>
    %cst_74 = arith.constant dense<0.000000e+00> : vector<64x128xf32>
    %96 = tpu.matmul %94, %95, %cst_74 {dimension_numbers = #tpu.dot_dimension_numbers<[1], [0], [0], [1], [0, 0, 1, 1], [], []>} : vector<64x128xbf16>, vector<128x128xbf16>, vector<64x128xf32> -> vector<64x128xf32>
    %c0_75 = arith.constant 0 : index
    %c0_76 = arith.constant 0 : index
    %97 = vector.load %arg10[%c0_75, %c0_76] : memref<1x128xf32, #tpu.memory_space<vmem>>, vector<1x128xf32>
    %98 = vector.broadcast %97 : vector<1x128xf32> to vector<64x128xf32>
    %99 = arith.addf %96, %98 : vector<64x128xf32>
    %100 = arith.addf %92, %99 : vector<64x128xf32>
    %cst_77 = arith.constant 0.000000e+00 : f32
    %101 = vector.broadcast %cst_77 : f32 to vector<64x128xf32>
    %102 = arith.maximumf %100, %101 : vector<64x128xf32>
    %103 = arith.truncf %102 : vector<64x128xf32> to vector<64x128xbf16>
    %c0_78 = arith.constant 0 : index
    %c0_79 = arith.constant 0 : index
    %c0_80 = arith.constant 0 : index
    %104 = vector.load %arg11[%c0_78, %c0_79, %c0_80] : memref<1x64x128xbf16, #tpu.memory_space<vmem>>, vector<1x64x128xbf16>
    %105 = vector.shape_cast %104 : vector<1x64x128xbf16> to vector<64x128xbf16>
    %106 = vector.shape_cast %103 : vector<64x128xbf16> to vector<1x64x128xbf16>
    tpu.vector_store %arg11[%c0_78, %c0_79, %c0_80], %106 {strides = array<i32>} : memref<1x64x128xbf16, #tpu.memory_space<vmem>>, vector<1x64x128xbf16>,
    return
  }
  func.func @transform_0(%arg0: i32) -> (i32, i32, i32) {
    %c0_i32 = arith.constant 0 : i32
    %c0_i32_0 = arith.constant 0 : i32
    %c0_i32_1 = arith.constant 0 : i32
    return %arg0, %c0_i32, %c0_i32_0 : i32, i32, i32
  }
  func.func @transform_1(%arg0: i32) -> (i32, i32, i32) {
    %c0_i32 = arith.constant 0 : i32
    %c0_i32_0 = arith.constant 0 : i32
    %c0_i32_1 = arith.constant 0 : i32
    return %arg0, %c0_i32, %c0_i32_0 : i32, i32, i32
  }
  func.func @transform_2(%arg0: i32) -> (i32, i32) {
    %c0_i32 = arith.constant 0 : i32
    %c0_i32_0 = arith.constant 0 : i32
    %c0_i32_1 = arith.constant 0 : i32
    return %c0_i32, %c0_i32_0 : i32, i32
  }
  func.func @transform_3(%arg0: i32) -> (i32, i32) {
    %c0_i32 = arith.constant 0 : i32
    %c0_i32_0 = arith.constant 0 : i32
    %c0_i32_1 = arith.constant 0 : i32
    return %c0_i32, %c0_i32_0 : i32, i32
  }
  func.func @transform_4(%arg0: i32) -> (i32, i32) {
    %c0_i32 = arith.constant 0 : i32
    %c0_i32_0 = arith.constant 0 : i32
    %c0_i32_1 = arith.constant 0 : i32
    return %c0_i32, %c0_i32_0 : i32, i32
  }
  func.func @transform_5(%arg0: i32) -> (i32, i32) {
    %c0_i32 = arith.constant 0 : i32
    %c0_i32_0 = arith.constant 0 : i32
    %c0_i32_1 = arith.constant 0 : i32
    return %c0_i32, %c0_i32_0 : i32, i32
  }
  func.func @transform_6(%arg0: i32) -> (i32, i32) {
    %c0_i32 = arith.constant 0 : i32
    %c0_i32_0 = arith.constant 0 : i32
    %c0_i32_1 = arith.constant 0 : i32
    return %c0_i32, %c0_i32_0 : i32, i32
  }
  func.func @transform_7(%arg0: i32) -> (i32, i32) {
    %c0_i32 = arith.constant 0 : i32
    %c0_i32_0 = arith.constant 0 : i32
    %c0_i32_1 = arith.constant 0 : i32
    return %c0_i32, %c0_i32_0 : i32, i32
  }
  func.func @transform_8(%arg0: i32) -> (i32, i32) {
    %c0_i32 = arith.constant 0 : i32
    %c0_i32_0 = arith.constant 0 : i32
    %c0_i32_1 = arith.constant 0 : i32
    return %c0_i32, %c0_i32_0 : i32, i32
  }
  func.func @transform_9(%arg0: i32) -> (i32, i32) {
    %c0_i32 = arith.constant 0 : i32
    %c0_i32_0 = arith.constant 0 : i32
    %c0_i32_1 = arith.constant 0 : i32
    return %c0_i32, %c0_i32_0 : i32, i32
  }
  func.func @transform_10(%arg0: i32) -> (i32, i32, i32) {
    %c0_i32 = arith.constant 0 : i32
    %c0_i32_0 = arith.constant 0 : i32
    %c0_i32_1 = arith.constant 0 : i32
    return %arg0, %c0_i32, %c0_i32_0 : i32, i32, i32
  }
}

</mosaic_0001>

<bundles_post_ra>
// kernel: tpu_custom_call.1
= control target key start
LH: loop header
LB: loop body
LE: loop exit
PB: predicated region body
PF: predicated region fallthrough
CT: control target
= control target key end

     0   :  { %s5337_s0 = inlined_call_operand.hbm [shape: bf16[2,256,128], index: 0, kind: input, shape index: {}]   ;;  %s5338_s1 = inlined_call_operand.hbm [shape: bf16[2,64,128], index: 1, kind: input, shape index: {}]   ;;  %s5339_s2 = inlined_call_operand.hbm [shape: bf16[128,128], index: 2, kind: input, shape index: {}]   ;;  %s5340_s3 = inlined_call_operand.vmem [shape: f32[1,128], index: 3, kind: input, shape index: {}]   ;;  %s5341_s4 = inlined_call_operand.hbm [shape: bf16[1152,128], index: 4, kind: input, shape index: {}]   ;;  %s5342_s5 = inlined_call_operand.vmem [shape: f32[1,128], index: 5, kind: input, shape index: {}]   ;;  %s5343_s6 = inlined_call_operand.hbm [shape: bf16[128,128], index: 6, kind: input, shape index: {}]   ;;  %s5344_s7 = inlined_call_operand.vmem [shape: f32[1,128], index: 7, kind: input, shape index: {}]   ;;  %s5345_s8 = inlined_call_operand.hbm [shape: bf16[128,128], index: 8, kind: input, shape index: {}]   ;;  %s5346_s9 = inlined_call_operand.vmem [shape: f32[1,128], index: 9, kind: input, shape index: {}]   ;;  %s5347_s10 = inlined_call_operand.hbm [shape: bf16[2,64,128], index: 10, kind: output, shape index: {}]  }
   0x1   :  { %5358 = sst [smem:[#allocation23_spill]] %s5337_s0 }
   0x2   :  { %5359 = sst [smem:[#allocation24_spill]] %s5339_s2 }
   0x3   :  { %5360 = sst [smem:[#allocation25_spill]] %s5341_s4 }
   0x4   :  { %5361 = sst [smem:[#allocation26_spill]] %s5343_s6 }
   0x5   :  { %5362 = sst [smem:[#allocation27_spill]] %s5346_s9 }
   0x6   :  { %5363 = sst [smem:[#allocation28_spill]] %s5347_s10 }
   0x7   :  { %15 = vsyncpa [#allocation4], 0 }
   0x8   :  { %17 = vsyncpa [#allocation4 + $0x1], 0 }
   0x9   :  { %18 = vsyncpa [#allocation7], 0 }
   0xa   :  { %20 = vsyncpa [#allocation7 + $0x1], 0 }
   0xb   :  { %21 = vsyncpa [#allocation10], 0 }
   0xc   :  { %22 = vsyncpa [#allocation13], 0 }
   0xd   :  { %23 = vsyncpa [#allocation5], 0 }
   0xe   :  { %25 = vsyncpa [#allocation5 + $0x1], 0  ;;  %s4734_s13 = smov 0   ;;  %s4736_s14 = smov 0  }
   0xf   :  { %s4738_s15 = smov 0   ;;  %s4740_s16 = smov 0  }
  0x10 LB: > { %5364 = sst [smem:[#allocation21_spill]] %s4653_s13  ;;  %s4755_s17 = sadd.s32 4294967295, %s4665_s16   ;;  %s4665_s16 = sphi %s4740_s16, %s5400_s16   ;;  %s4661_s15 = sphi %s4738_s15, %s5399_s15   ;;  %s4657_s14 = sphi %s4736_s14, %s5398_s14   ;;  %s4653_s13 = sphi %s4734_s13, %s5397_s13  }
  0x11   : > { %s3446_s18 = sadd.s32 4294967294, %s4665_s16   ;;  %p51_p0 = scmp.ne.s32.totalorder %s4657_s14, %s4653_s13 }
  0x12   : > { %p5348_p1 = scmp.eq.s32.totalorder %s4755_s17, 0  ;;  %p275_p3 = scmp.eq.s32.totalorder %s3446_s18, 1 }
  0x13   : > { %p3447_p5 = scmp.ge.s32.totalorder %s4665_s16, 1  ;;  %p282_p7 = scmp.lt.s32.totalorder %s4665_s16, 3 }
  0x14   : > { %p4764_p4 = por %p5348_p1, %p51_p0  ;;  %p4769_p6 = por %p275_p3, %p51_p0 }
  0x15   : > { %p4774_p8 = pnand %p3447_p5, %p282_p7  ;;  %s4667_s22 = smov [#allocation8]  }
  0x16   : > { %s5365_s19 = scalar_select %p4764_p4, 1, 0 }
  0x17   : > { %s5366_s20 = scalar_select %p4769_p6, 1, 0 }
  0x18   : > { %s5368_s21 = scalar_select %p4774_p8, 1, 0 }
  0x19   : > { %5367 = sst [smem:[#allocation22_spill]] %s5366_s20  ;;  %s294_s23 = sshll.u32 %s4667_s22, 4  ;;  %s4778_s23 = int_to_ptr.vmem [resolvable:$true] %s294_s23 }
  0x1a   : > { %p4208_p9 = pneg %p4774_p8  ;;  %s4668_s25 = smov [#allocation9]  }
  0x1b   : > { %s310_s26 = sshll.u32 %s4668_s25, 4  ;;  %s4669_s27 = smov [#allocation11]   ;;  %s4789_s26 = int_to_ptr.vmem [resolvable:$true] %s310_s26 }
  0x1c   : > { %p4785_p11 = pnand %p4208_p9, %p5348_p1  ;;  %s4791_s28 = sshll.u32 %s4669_s27, 4  ;;  %s327_s28 = int_to_ptr.vmem [resolvable:$true] %s4791_s28 }
  0x1d   : > { %s5370_s2 = sld [smem:[#allocation24_spill]] }
  0x1e   : > { %p4801_p13 = pneg %p4785_p11 }
  0x23   : > { %s4411_s11 = scalar_lea.hbm %s5370_s2, 1024 }
  0x24   : > { %p4412_p12 = scmp.ne.s32.totalorder %s5370_s2, %s4411_s11  ;;  %p4418_p5 = scmp.lt.u32.totalorder %s4411_s11, %s5370_s2 }
  0x26   : > { %p4414_p0 = pnand %p4801_p13, %p4412_p12 }
  0x28   : > { %p4415_p3 = pneg %p4414_p0 }
  0x2a   : > { %p4420_p7 = pnand %p4418_p5, %p4415_p3 }
  0x2c   : > { %4423 = shalt.err (!%p4420_p7)
}
  0x2d   : > { %s4424_s29 = scalar_lea.vmem %s4778_s23, 1024  ;;  %p4432_p2 = scmp.lt.s32.totalorder %s4778_s23, %s4778_s23 }
  0x2e   : > { %p4425_p9 = scmp.ne.s32.totalorder %s4778_s23, %s4424_s29  ;;  %p4433_p6 = scmp.lt.s32.totalorder %s4424_s29, %s4424_s29 }
  0x30   : > { %p4427_p10 = pnand %p4425_p9, %p4801_p13  ;;  %p4434_p12 = por %p4433_p6, %p4432_p2 }
  0x32   : > { %p4428_p1 = pneg %p4427_p10 }
  0x34   : > { %p4435_p0 = pnand %p4434_p12, %p4428_p1 }
  0x36   : > { %4438 = shalt.err (!%p4435_p0)
}
  0x37   : > { %s5354_s30 = smov 64   ;;  %s5356_s11 = smov 4  }
  0x38   : > { %4211 = dma.hbm_to_vmem [thread:$0]  (!%p4785_p11), %s5370_s2, 1024, %s4778_s23, [#allocation7], %s5354_s30, %s5354_s30, %s5356_s11  }
  0x39   : > { %s5372_s4 = sld [smem:[#allocation25_spill]] }
  0x3f   : > { %s4439_s29 = scalar_lea.hbm %s5372_s4, 9216 }
  0x40   : > { %p4440_p1 = scmp.ne.s32.totalorder %s5372_s4, %s4439_s29  ;;  %p4446_p10 = scmp.lt.u32.totalorder %s4439_s29, %s5372_s4 }
  0x42   : > { %p4442_p2 = pnand %p4440_p1, %p4801_p13 }
  0x44   : > { %p4443_p6 = pneg %p4442_p2 }
  0x46   : > { %p4448_p3 = pnand %p4446_p10, %p4443_p6 }
  0x48   : > { %4451 = shalt.err (!%p4448_p3)
}
  0x49   : > { %s4452_s23 = scalar_lea.vmem %s4789_s26, 9216  ;;  %p4460_p12 = scmp.lt.s32.totalorder %s4789_s26, %s4789_s26 }
  0x4a   : > { %p4453_p5 = scmp.ne.s32.totalorder %s4789_s26, %s4452_s23  ;;  %p4461_p0 = scmp.lt.s32.totalorder %s4452_s23, %s4452_s23 }
  0x4c   : > { %p4455_p7 = pnand %p4453_p5, %p4801_p13  ;;  %p4462_p1 = por %p4461_p0, %p4460_p12 }
  0x4e   : > { %p4456_p9 = pneg %p4455_p7 }
  0x50   : > { %p4463_p2 = pnand %p4462_p1, %p4456_p9 }
  0x52   : > { %4466 = shalt.err (!%p4463_p2)
}
  0x53   : > { %4214 = dma.hbm_to_vmem [thread:$0]  (!%p4785_p11), %s5372_s4, 9216, %s4789_s26, [#allocation10], %s5354_s30, %s5354_s30, %s5356_s11  }
  0x54   : > { %s5373_s6 = sld [smem:[#allocation26_spill]] }
  0x5a   : > { %s4467_s12 = scalar_lea.hbm %s5373_s6, 1024 }
  0x5b   : > { %p4468_p6 = scmp.ne.s32.totalorder %s5373_s6, %s4467_s12  ;;  %p4474_p5 = scmp.lt.u32.totalorder %s4467_s12, %s5373_s6 }
  0x5d   : > { %p4470_p10 = pnand %p4468_p6, %p4801_p13 }
  0x5f   : > { %p4471_p3 = pneg %p4470_p10 }
  0x61   : > { %p4476_p7 = pnand %p4474_p5, %p4471_p3 }
  0x63   : > { %4479 = shalt.err (!%p4476_p7)
}
  0x64   : > { %s4480_s23 = scalar_lea.vmem %s327_s28, 1024  ;;  %p4488_p1 = scmp.lt.s32.totalorder %s327_s28, %s327_s28 }
  0x65   : > { %p4481_p9 = scmp.ne.s32.totalorder %s327_s28, %s4480_s23  ;;  %p4489_p2 = scmp.lt.s32.totalorder %s4480_s23, %s4480_s23 }
  0x67   : > { %p4483_p12 = pnand %p4481_p9, %p4801_p13  ;;  %p4490_p4 = por %p4489_p2, %p4488_p1 }
  0x69   : > { %p4484_p0 = pneg %p4483_p12 }
  0x6b   : > { %p4491_p8 = pnand %p4490_p4, %p4484_p0 }
  0x6d   : > { %4494 = shalt.err (!%p4491_p8)
}
  0x6e   : > { %4217 = dma.hbm_to_vmem [thread:$0]  (!%p4785_p11), %s5373_s6, 1024, %s327_s28, [#allocation10], %s5354_s30, %s5354_s30, %s5356_s11  }
  0x6f   : > { %s4672_s10 = smov [#allocation12]   ;;  %s4495_s18 = scalar_lea.hbm %s5345_s8, 1024 }
  0x70   : > { %s342_s13 = sshll.u32 %s4672_s10, 4  ;;  %p4496_p4 = scmp.ne.s32.totalorder %s5345_s8, %s4495_s18  ;;  %s343_s13 = int_to_ptr.vmem [resolvable:$true] %s342_s13 }
  0x71   : > { %p4502_p10 = scmp.lt.u32.totalorder %s4495_s18, %s5345_s8 }
  0x72   : > { %p4498_p8 = pnand %p4496_p4, %p4801_p13 }
  0x74   : > { %p4499_p6 = pneg %p4498_p8 }
  0x76   : > { %p4504_p3 = pnand %p4502_p10, %p4499_p6 }
  0x78   : > { %4507 = shalt.err (!%p4504_p3)
}
  0x79   : > { %s4508_s28 = scalar_lea.vmem %s343_s13, 1024  ;;  %p4516_p12 = scmp.lt.s32.totalorder %s343_s13, %s343_s13 }
  0x7a   : > { %p4509_p5 = scmp.ne.s32.totalorder %s343_s13, %s4508_s28  ;;  %p4517_p0 = scmp.lt.s32.totalorder %s4508_s28, %s4508_s28 }
  0x7c   : > { %p4511_p7 = pnand %p4509_p5, %p4801_p13  ;;  %p4518_p1 = por %p4517_p0, %p4516_p12 }
  0x7e   : > { %p4512_p9 = pneg %p4511_p7 }
  0x80   : > { %p4519_p2 = pnand %p4518_p1, %p4512_p9 }
  0x82   : > { %4522 = shalt.err (!%p4519_p2)
}
  0x83   : > { %4220 = dma.hbm_to_vmem [thread:$0]  (!%p4785_p11), %s5345_s8, 1024, %s343_s13, [#allocation13], %s5354_s30, %s5354_s30, %s5356_s11  }
  0x84   : > { %s4895_s22 = sadd.s32 1, %s4665_s16   ;;  %s38_s24 = sadd.s32 1, %s4661_s15 }
  0x85   : > { %s35_s10 = ssub.s32 %s4665_s16, %s4895_s22  ;;  %p45_p13 = scmp.ne.s32.totalorder %s4661_s15, %s4657_s14 }
  0x86   : > { %p36_p4 = scmp.eq.s32.totalorder %s35_s10, 0  ;;  %p46_p8 = scmp.eq.s32.totalorder %s4665_s16, 0 }
  0x87   : > { %p5374_p6 = scmp.eq.s32.totalorder %s4755_s17, 1  ;;  %p4236_p3 = scmp.lt.s32.totalorder %s4665_s16, 2 }
  0x88   : > { %s4911_s12 = scalar_select %p36_p4, %s4661_s15, %s38_s24  }
  0x89   : > { %p4905_p10 = por %p5374_p6, %p45_p13  ;;  %p47_p5 = por %p46_p8, %p45_p13 }
  0x8a   : > { %s4914_s18 = sand.u32 1, %s4661_s15   ;;  %s3668_s25 = sshll.u32 %s4665_s16, 11 }
  0x8b   : > { %s3453_s13 = sshll.u32 %s4914_s18, 7  ;;  %s5376_s0 = sld [smem:[#allocation23_spill]] }
  0x8c   : > { %s363_s28 = scalar_lea.vmem [#allocation3], %s3453_s13  ;;  %p4925_p11 = pnand %p4236_p3, %p47_p5 }
  0x8d   : > { %s370_s26 = sshll.u32 %s363_s28, 4  ;;  %s3456_s10 = sshll.u32 %s4914_s18, 5  ;;  %s4923_s26 = int_to_ptr.vmem [resolvable:$true] %s370_s26 }
  0x8e   : > { %s360_s30 = scalar_lea.sflag [#allocation4], %s4914_s18  ;;  %p4525_p9 = pneg %p4925_p11 }
  0x91   : > { %s4921_s23 = scalar_lea.hbm %s5376_s0, %s3668_s25  ;;  %s4528_s29 = scalar_lea.hbm %s5376_s0, 4096 }
  0x92   : > { %s4523_s27 = scalar_lea.hbm %s4921_s23, 2048  ;;  %p4529_p1 = scmp.lt.u32.totalorder %s4921_s23, %s5376_s0 }
  0x93   : > { %p4524_p7 = scmp.ne.s32.totalorder %s4921_s23, %s4523_s27  ;;  %p4530_p2 = scmp.lt.u32.totalorder %s4528_s29, %s4523_s27 }
  0x94   : > { %p4532_p4 = scmp.lt.u32.totalorder %s4523_s27, %s4921_s23 }
  0x95   : > { %p4526_p12 = pnand %p4525_p9, %p4524_p7  ;;  %p4531_p13 = por %p4530_p2, %p4529_p1 }
  0x97   : > { %p4527_p0 = pneg %p4526_p12  ;;  %p4533_p8 = por %p4532_p4, %p4531_p13 }
  0x99   : > { %p4534_p6 = pnand %p4533_p8, %p4527_p0 }
  0x9b   : > { %4537 = shalt.err (!%p4534_p6)
}
  0x9c   : > { %s4538_s24 = scalar_lea.vmem %s4923_s26, 2048  ;;  %s4673_s13 = smov [#allocation3]  }
  0x9d   : > { %p4539_p3 = scmp.ne.s32.totalorder %s4923_s26, %s4538_s24  ;;  %s4543_s25 = sshll.u32 %s4673_s13, 4  ;;  %s4544_s25 = int_to_ptr.vmem [resolvable:$false] %s4543_s25 }
  0x9e   : > { %s4545_s11 = scalar_lea.vmem %s4544_s25, 4096  ;;  %p4546_p12 = scmp.lt.s32.totalorder %s4923_s26, %s4544_s25 }
  0x9f   : > { %p4541_p5 = pnand %p4539_p3, %p4525_p9  ;;  %p4547_p1 = scmp.lt.s32.totalorder %s4545_s11, %s4538_s24 }
  0xa1   : > { %p4542_p7 = pneg %p4541_p5  ;;  %p4548_p2 = por %p4547_p1, %p4546_p12 }
  0xa3   : > { %p4549_p13 = pnand %p4548_p2, %p4542_p7 }
  0xa5   : > { %4552 = shalt.err (!%p4549_p13)
}
  0xa6   : > { %s5378_s27 = smov 4   ;;  %s5379_s29 = smov 64  }
  0xa7   : > { %4224 = dma.hbm_to_vmem [thread:$0]  (!%p4925_p11), %s4921_s23, 2048, %s4923_s26, %s360_s30, %s5379_s29, %s5379_s29, %s5378_s27  }
  0xa8   : > { %s3669_s28 = sshll.u32 %s4665_s16, 9  ;;  %s384_s11 = scalar_lea.vmem [#allocation6], %s3456_s10 }
  0xa9   : > { %s4966_s25 = scalar_lea.hbm %s5338_s1, %s3669_s28  ;;  %s391_s0 = sshll.u32 %s384_s11, 4  ;;  %s4970_s0 = int_to_ptr.vmem [resolvable:$true] %s391_s0 }
  0xaa   : > { %s5380_s2 = sand.u32 1, %s4665_s16   ;;  %s4553_s6 = scalar_lea.hbm %s4966_s25, 512 }
  0xab   : > { %s4974_s4 = scalar_lea.sflag [#allocation7], %s5380_s2  ;;  %p4554_p0 = scmp.ne.s32.totalorder %s4966_s25, %s4553_s6 }
  0xac   : > { %s4558_s18 = scalar_lea.hbm %s5338_s1, 1024  ;;  %p4559_p6 = scmp.lt.u32.totalorder %s4966_s25, %s5338_s1 }
  0xad   : > { %p4556_p4 = pnand %p4554_p0, %p4525_p9  ;;  %p4560_p3 = scmp.lt.u32.totalorder %s4558_s18, %s4553_s6 }
  0xae   : > { %p4562_p7 = scmp.lt.u32.totalorder %s4553_s6, %s4966_s25 }
  0xaf   : > { %p4557_p8 = pneg %p4556_p4  ;;  %p4561_p5 = por %p4560_p3, %p4559_p6 }
  0xb1   : > { %p4563_p12 = por %p4562_p7, %p4561_p5 }
  0xb3   : > { %p4564_p1 = pnand %p4563_p12, %p4557_p8 }
  0xb5   : > { %4567 = shalt.err (!%p4564_p1)
}
  0xb6   : > { %s4568_s2 = scalar_lea.vmem %s4970_s0, 512  ;;  %s4674_s10 = smov [#allocation6]  }
  0xb7   : > { %p4569_p2 = scmp.ne.s32.totalorder %s4970_s0, %s4568_s2  ;;  %s4573_s13 = sshll.u32 %s4674_s10, 4  ;;  %s4574_s13 = int_to_ptr.vmem [resolvable:$false] %s4573_s13 }
  0xb8   : > { %s4575_s24 = scalar_lea.vmem %s4574_s13, 1024  ;;  %p4576_p4 = scmp.lt.s32.totalorder %s4970_s0, %s4574_s13 }
  0xb9   : > { %p4571_p13 = pnand %p4569_p2, %p4525_p9  ;;  %p4577_p6 = scmp.lt.s32.totalorder %s4575_s24, %s4568_s2 }
  0xbb   : > { %p4572_p0 = pneg %p4571_p13  ;;  %p4578_p3 = por %p4577_p6, %p4576_p4 }
  0xbd   : > { %p4579_p5 = pnand %p4578_p3, %p4572_p0 }
  0xbf   : > { %4582 = shalt.err (!%p4579_p5)
}
  0xc0   : > { %4227 = dma.hbm_to_vmem [thread:$0]  (!%p4925_p11), %s4966_s25, 512, %s4970_s0, %s4974_s4, %s5379_s29, %s5379_s29, %s5378_s27  }
  0xc1   : > { %p5381_p9 = scmp.ne.s32.totalorder %s5368_s21, 0 }
  0xc2   : > { %s5006_s6 = sand.u32 (!%p5381_p9), 1, %s4657_s14   ;;  %p5382_p8 = scmp.ne.s32.totalorder (!%p5381_p9), %s5365_s19, 0 }
  0xc3   : > { %403 = sbr.rel (%p5381_p9) target bundleno = 1129 (0x469), region = 60  ;;  %s3460_s11 = sshll.u32 (!%p5381_p9), %s5006_s6, 7 }
  0xc4   : > { %s406_s30 = scalar_lea.sflag (!%p5381_p9), [#allocation4], %s5006_s6  ;;  %s5010_s23 = scalar_lea.vmem (!%p5381_p9), [#allocation3], %s3460_s11 }
  0xca   : > { %4628 = dma.done.wait (%p5382_p8), %s406_s30, 2048  }
  0xcb   : > { %4630 = vsyncadd (%p5382_p8), %s406_s30, 4294965248  ;;  %s414_s0 = sand.u32 1, %s4755_s17   ;;  %s3461_s4 = sshll.u32 %s5006_s6, 5 }
  0xcc   : > { %s415_s21 = scalar_lea.sflag [#allocation7], %s414_s0  ;;  %s5020_s9 = scalar_lea.vmem [#allocation6], %s3461_s4 }
  0xcd   : > { %4632 = dma.done.wait (%p5382_p8), %s415_s21, 512  }
  0xce   : > { %4634 = vsyncadd (%p5382_p8), %s415_s21, 4294966784  ;;  %p5383_p11 = scmp.eq.s32.totalorder %s4755_s17, 0 }
  0xd0   : > { %4636 = dma.done.wait (%p5383_p11), [#allocation7], 1024   ;;  %p5384_p7 = pmov %p5383_p11 }
  0xd2   : > { %4638 = vsyncadd (%p5384_p7), [#allocation7], 4294966272  ;;  %p5385_p12 = pmov %p5384_p7 }
  0xd3   : > { %p5386_p1 = pmov %p5384_p7 }
  0xd4   : > { %4640 = dma.done.wait (%p5385_p12), [#allocation10], 10240  }
  0xd5   : > { %4642 = vsyncadd (%p5386_p1), [#allocation10], 4294957056  ;;  %p5387_p2 = pmov %p5386_p1 }
  0xd6   : > { %p5388_p13 = pmov %p5386_p1 }
  0xd7   : > { %4644 = dma.done.wait (%p5387_p2), [#allocation13], 1024  }
  0xd8   : > { %4646 = vsyncadd (%p5388_p13), [#allocation13], 4294966272  ;;  %v4675_v0 = vmov 0   ;;  %v4283_v1 = vld [vmem:[#allocation8] sm:$0xff]   ;;  %v4284_v2 = vld [vmem:[#allocation8 + $0x8] sm:$0xff]   ;;  %vm1114_vm0 = vcmask 1044480  }
  0xd9   : > { %933 = vst [vmem:[#allocation2] sm:$0xff] %v4675_v0  ;;  %934 = vst [vmem:[#allocation2 + $0x8] sm:$0xff] %v4675_v0  ;;  %3938 = vmatprep.subr.bf16.mxu0 %v4283_v1  ;;  %4106 = vmatprep.subr.bf16.mxu1 %v4283_v1  ;;  %v4285_v3 = vld [vmem:[#allocation8 + $0x10] sm:$0xff]   ;;  %v4286_v4 = vld [vmem:[#allocation8 + $0x18] sm:$0xff]   ;;  %vm1115_vm1 = vsmask.f32 4354 }
  0xda   : > { %935 = vst [vmem:[#allocation2 + $0x10] sm:$0xff] %v4675_v0  ;;  %936 = vst [vmem:[#allocation2 + $0x18] sm:$0xff] %v4675_v0  ;;  %3939 = vmatpush3.bf16.msra.mxu0 %v4283_v1  ;;  %4114 = vmatpush3.bf16.msra.mxu1 %v4283_v1  ;;  %v4291_v5 = vld [vmem:[%s5010_s23] sm:$0xff]   ;;  %v4288_v8 = vld [vmem:[#allocation8 + $0x28] sm:$0xff]   ;;  %s5391_s10 = sld [smem:[#allocation27_spill]]  ;;  %s475_s13 = scalar_lea.vmem [#allocation14], %s3461_s4 }
  0xdb   : > { %937 = vst [vmem:[#allocation2 + $0x20] sm:$0xff] %v4675_v0  ;;  %938 = vst [vmem:[#allocation2 + $0x28] sm:$0xff] %v4675_v0  ;;  %3940 = vmatprep.subr.bf16.mxu0 %v4284_v2  ;;  %4107 = vmatprep.subr.bf16.mxu1 %v4284_v2  ;;  %v4292_v6 = vld [vmem:[%s5010_s23 + $0x40] sm:$0xff]   ;;  %v4289_v9 = vld [vmem:[#allocation8 + $0x30] sm:$0xff]   ;;  %s3312_s24 = sshll.u32 %s475_s13, 4  ;;  %s3710_s11 = sshll.u32 %s4755_s17, 9  ;;  %s5288_s24 = int_to_ptr.vmem [resolvable:$true] %s3312_s24 }
  0xdc   : > { %939 = vst [vmem:[#allocation2 + $0x30] sm:$0xff] %v4675_v0  ;;  %940 = vst [vmem:[#allocation2 + $0x38] sm:$0xff] %v4675_v0  ;;  %3954 = vmatprep.mubr.bf16.mxu0 %v4291_v5  ;;  %v4287_v7 = vld [vmem:[#allocation8 + $0x20] sm:$0xff]   ;;  %3970 = vmatprep.mubr.bf16.mxu1 %v4292_v6  ;;  %v4290_v10 = vld [vmem:[#allocation8 + $0x38] sm:$0xff]   ;;  %s5392_s0 = sld [smem:[#allocation28_spill]]  ;;  %s3299_s21 = scalar_lea.sflag [#allocation5], %s5006_s6 }
  0xdd   : > { %941 = vst [vmem:[#allocation2 + $0x40] sm:$0xff] %v4675_v0  ;;  %942 = vst [vmem:[#allocation2 + $0x48] sm:$0xff] %v4675_v0  ;;  %v4307_v11 = vld [vmem:[#allocation9 + $0x100] sm:$0xff]   ;;  %v4293_v12 = vld [vmem:[%s5010_s23 + $0x8] sm:$0xff]   ;;  %s4583_s17 = scalar_lea.vmem %s5288_s24, 512 }
  0xde   : > { %943 = vst [vmem:[#allocation2 + $0x50] sm:$0xff] %v4675_v0  ;;  %944 = vst [vmem:[#allocation2 + $0x58] sm:$0xff] %v4675_v0  ;;  %3941 = vmatpush3.bf16.msra.mxu0 %v4284_v2  ;;  %4115 = vmatpush3.bf16.msra.mxu1 %v4284_v2  ;;  %v4294_v13 = vld [vmem:[%s5010_s23 + $0x48] sm:$0xff]   ;;  %v4295_v14 = vld [vmem:[%s5010_s23 + $0x10] sm:$0xff]   ;;  %p4584_p0 = scmp.ne.s32.totalorder %s5288_s24, %s4583_s17 }
  0xdf   : > { %945 = vst [vmem:[#allocation2 + $0x60] sm:$0xff] %v4675_v0  ;;  %946 = vst [vmem:[#allocation2 + $0x68] sm:$0xff] %v4675_v0  ;;  %3942 = vmatprep.subr.bf16.mxu0 %v4285_v3  ;;  %4108 = vmatprep.subr.bf16.mxu1 %v4285_v3  ;;  %v4296_v15 = vld [vmem:[%s5010_s23 + $0x50] sm:$0xff]   ;;  %v4297_v16 = vld [vmem:[%s5010_s23 + $0x18] sm:$0xff]  }
  0xe0   : > { %947 = vst [vmem:[#allocation2 + $0x70] sm:$0xff] %v4675_v0  ;;  %948 = vst [vmem:[#allocation2 + $0x78] sm:$0xff] %v4675_v0  ;;  %v4298_v17 = vld [vmem:[%s5010_s23 + $0x58] sm:$0xff]   ;;  %v4299_v18 = vld [vmem:[%s5010_s23 + $0x20] sm:$0xff]   ;;  %p4585_p4 = pnand %p4584_p0, %p4905_p10 }
  0xe1   : > { %949 = vst [vmem:[#allocation2 + $0x80] sm:$0xff] %v4675_v0  ;;  %951 = vst [vmem:[#allocation2 + $0x90] sm:$0xff] %v4675_v0  ;;  %v4300_v19 = vld [vmem:[%s5010_s23 + $0x60] sm:$0xff]   ;;  %v4301_v20 = vld [vmem:[%s5010_s23 + $0x28] sm:$0xff]  }
  0xe2   : > { %952 = vst [vmem:[#allocation2 + $0x98] sm:$0xff] %v4675_v0  ;;  %953 = vst [vmem:[#allocation2 + $0xa0] sm:$0xff] %v4675_v0  ;;  %3943 = vmatpush3.bf16.msra.mxu0 %v4285_v3  ;;  %4116 = vmatpush3.bf16.msra.mxu1 %v4285_v3  ;;  %v4302_v21 = vld [vmem:[%s5010_s23 + $0x68] sm:$0xff]   ;;  %v4303_v22 = vld [vmem:[%s5010_s23 + $0x30] sm:$0xff]   ;;  %s5293_s4 = scalar_lea.hbm %s5392_s0, %s3710_s11  ;;  %p4586_p6 = pneg %p4585_p4 }
  0xe3   : > { %954 = vst [vmem:[#allocation2 + $0xa8] sm:$0xff] %v4675_v0  ;;  %955 = vst [vmem:[#allocation2 + $0xb0] sm:$0xff] %v4675_v0  ;;  %3944 = vmatprep.subr.bf16.mxu0 %v4286_v4  ;;  %4109 = vmatprep.subr.bf16.mxu1 %v4286_v4  ;;  %v4304_v23 = vld [vmem:[%s5010_s23 + $0x70] sm:$0xff]   ;;  %v4305_v24 = vld [vmem:[%s5010_s23 + $0x38] sm:$0xff]  }
  0xe4   : > { %956 = vst [vmem:[#allocation2 + $0xb8] sm:$0xff] %v4675_v0  ;;  %957 = vst [vmem:[#allocation2 + $0xc0] sm:$0xff] %v4675_v0  ;;  %v4306_v25 = vld [vmem:[%s5010_s23 + $0x78] sm:$0xff]   ;;  %v4308_v26 = vld [vmem:[#allocation9 + $0xc0] sm:$0xff]  }
  0xe5   : > { %958 = vst [vmem:[#allocation2 + $0xc8] sm:$0xff] %v4675_v0  ;;  %959 = vst [vmem:[#allocation2 + $0xd0] sm:$0xff] %v4675_v0  ;;  %v4309_v27 = vld [vmem:[#allocation9 + $0x40] sm:$0xff]   ;;  %v4310_v28 = vld [vmem:[#allocation9 + $0x108] sm:$0xff]  }
  0xe6   : > { %960 = vst [vmem:[#allocation2 + $0xd8] sm:$0xff] %v4675_v0  ;;  %961 = vst [vmem:[#allocation2 + $0xe0] sm:$0xff] %v4675_v0  ;;  %3945 = vmatpush3.bf16.msra.mxu0 %v4286_v4  ;;  %4117 = vmatpush3.bf16.msra.mxu1 %v4286_v4  ;;  %v4311_v29 = vld [vmem:[#allocation9] sm:$0xff]   ;;  %v4312_v30 = vld [vmem:[#allocation9 + $0xc8] sm:$0xff]  }
  0xe7   : > { %962 = vst [vmem:[#allocation2 + $0xe8] sm:$0xff] %v4675_v0  ;;  %963 = vst [vmem:[#allocation2 + $0xf0] sm:$0xff] %v4675_v0  ;;  %3946 = vmatprep.subr.bf16.mxu0 %v4287_v7  ;;  %4110 = vmatprep.subr.bf16.mxu1 %v4287_v7  ;;  %v4313_v31 = vld [vmem:[#allocation9 + $0x48] sm:$0xff]   ;;  %v4314_v32 = vld [vmem:[#allocation9 + $0x110] sm:$0xff]  }
  0xe8   : > { %964 = vst [vmem:[#allocation2 + $0xf8] sm:$0xff] %v4675_v0  ;;  %965 = vst [vmem:[#allocation2 + $0x100] sm:$0xff] %v4675_v0  ;;  %v4315_v33 = vld [vmem:[#allocation9 + $0x8] sm:$0xff]   ;;  %v4316_v34 = vld [vmem:[#allocation9 + $0xd0] sm:$0xff]  }
  0xe9   : > { %966 = vst [vmem:[#allocation2 + $0x108] sm:$0xff] %v4675_v0  ;;  %967 = vst [vmem:[#allocation2 + $0x110] sm:$0xff] %v4675_v0  ;;  %v4317_v35 = vld [vmem:[#allocation9 + $0x50] sm:$0xff]   ;;  %v4318_v36 = vld [vmem:[#allocation9 + $0x118] sm:$0xff]  }
  0xea   : > { %3947 = vmatpush3.bf16.msra.mxu0 %v4287_v7  ;;  %4118 = vmatpush3.bf16.msra.mxu1 %v4287_v7  ;;  %v4319_v37 = vld [vmem:[#allocation9 + $0x10] sm:$0xff]   ;;  %v4320_v38 = vld [vmem:[#allocation9 + $0xd8] sm:$0xff]   ;;  %v4322_v40 = vld [vmem:[#allocation9 + $0x120] sm:$0xff]  }
  0xeb   : > { %3948 = vmatprep.subr.bf16.mxu0 %v4288_v8  ;;  %4111 = vmatprep.subr.bf16.mxu1 %v4288_v8  ;;  %v4321_v39 = vld [vmem:[#allocation9 + $0x58] sm:$0xff]   ;;  %v4324_v42 = vld [vmem:[#allocation9 + $0xe0] sm:$0xff]   ;;  %v4326_v44 = vld [vmem:[#allocation9 + $0x128] sm:$0xff]  }
  0xec   : > { %v4323_v41 = vld [vmem:[#allocation9 + $0x18] sm:$0xff]   ;;  %v4325_v43 = vld [vmem:[#allocation9 + $0x60] sm:$0xff]   ;;  %v4328_v46 = vld [vmem:[#allocation9 + $0xe8] sm:$0xff]  }
  0xed   : > { %v4327_v45 = vld [vmem:[#allocation9 + $0x20] sm:$0xff]   ;;  %v4329_v47 = vld [vmem:[#allocation9 + $0x68] sm:$0xff]   ;;  %v4330_v48 = vld [vmem:[#allocation9 + $0x130] sm:$0xff]  }
  0xee   : > { %3949 = vmatpush3.bf16.msra.mxu0 %v4288_v8  ;;  %4119 = vmatpush3.bf16.msra.mxu1 %v4288_v8  ;;  %v4331_v49 = vld [vmem:[#allocation9 + $0x28] sm:$0xff]   ;;  %v4332_v50 = vld [vmem:[#allocation9 + $0xf0] sm:$0xff]   ;;  %v4334_v52 = vld [vmem:[#allocation9 + $0x138] sm:$0xff]  }
  0xef   : > { %3950 = vmatprep.subr.bf16.mxu0 %v4289_v9  ;;  %4112 = vmatprep.subr.bf16.mxu1 %v4289_v9  ;;  %v4333_v51 = vld [vmem:[#allocation9 + $0x70] sm:$0xff]   ;;  %v4336_v54 = vld [vmem:[#allocation9 + $0xf8] sm:$0xff]   ;;  %v5054_v56 = vld [vmem:[#allocation9 + $0x140] sm:$0xff]  }
  0xf0   : > { %v4335_v53 = vld [vmem:[#allocation9 + $0x30] sm:$0xff]   ;;  %v4337_v55 = vld [vmem:[#allocation9 + $0x78] sm:$0xff]   ;;  %v4342_v58 = vld [vmem:[#allocation9 + $0x1c0] sm:$0xff]  }
  0xf1   : > { %v4339_v57 = vld [vmem:[#allocation9 + $0x38] sm:$0xff]   ;;  %v5057_v59 = vld [vmem:[#allocation2] sm:$0x1f]  ;;  %vm5078_vm2 = vmand %vm1114_vm0, %vm1115_vm1 }
  0xf2   : > { %3951 = vmatpush3.bf16.msra.mxu0 %v4289_v9  ;;  %4120 = vmatpush3.bf16.msra.mxu1 %v4289_v9  ;;  %v5062_v60 = vld [vmem:[%s5340_s3] ss:$0 sm:$0xff]  ;;  %v1386_v61 = vshll.u32 %v5057_v59, 16  ;;  %v1384_v8 = vshrl.u32 %v5057_v59, 16 }
  0xf3   : > { %3952 = vmatprep.subr.bf16.mxu0 %v4290_v10  ;;  %4113 = vmatprep.subr.bf16.mxu1 %v4290_v10 }
  0xf4   : > { %v5070_v9 = vrot.slane %v1386_v61, 1 }
  0xf6   : > { %3953 = vmatpush3.bf16.msra.mxu0 %v4290_v10  ;;  %4121 = vmatpush3.bf16.msra.mxu1 %v4290_v10 }
  0xf7   : > { %3758 = vmatprep.subr.bf16.mxu1 %v4307_v11  ;;  %3810 = vmatprep.subr.bf16.mxu0 %v4309_v27 }
  0xf9   : > { %3955 = vmatmul.mubr.bf16.vlgmr.msra.gmra.mrb[0].mxu0 %v4293_v12  ;;  %3971 = vmatmul.mubr.bf16.vlgmr.msra.gmra.mrb[0].mxu1 %v4294_v13 }
  0xfa   : > { %3958 = vmatprep.mubr.bf16.mxu0 %v4295_v14  ;;  %3974 = vmatprep.mubr.bf16.mxu1 %v4296_v15 }
  0xfb   : > { %3759 = vmatpush3.bf16.msra.mxu1 %v4308_v26  ;;  %3811 = vmatpush3.bf16.msra.mxu0 %v4311_v29 }
  0xfc   : > { %3760 = vmatprep.subr.bf16.mxu1 %v4310_v28  ;;  %3812 = vmatprep.subr.bf16.mxu0 %v4313_v31 }
  0xff   : > { %3761 = vmatpush3.bf16.msra.mxu1 %v4312_v30  ;;  %3813 = vmatpush3.bf16.msra.mxu0 %v4315_v33 }
 0x100   : > { %3762 = vmatprep.subr.bf16.mxu1 %v4314_v32  ;;  %3814 = vmatprep.subr.bf16.mxu0 %v4317_v35  ;;  %v1123_v32 = vld [vmem:[#allocation2 + $0x18] sm:$0x1f] }
 0x101   : > { %3959 = vmatmul.mubr.bf16.gmra.mrb[4].mxu0 %v4297_v16  ;;  %3975 = vmatmul.mubr.bf16.gmra.mrb[4].mxu1 %v4298_v17 }
 0x102   : > { %3962 = vmatprep.mubr.bf16.mxu0 %v4299_v18  ;;  %3978 = vmatprep.mubr.bf16.mxu1 %v4300_v19 }
 0x103   : > { %3763 = vmatpush3.bf16.msra.mxu1 %v4316_v34  ;;  %3815 = vmatpush3.bf16.msra.mxu0 %v4319_v37 }
 0x104   : > { %3764 = vmatprep.subr.bf16.mxu1 %v4318_v36  ;;  %3816 = vmatprep.subr.bf16.mxu0 %v4321_v39 }
 0x107   : > { %3765 = vmatpush3.bf16.msra.mxu1 %v4320_v38  ;;  %3817 = vmatpush3.bf16.msra.mxu0 %v4323_v41  ;;  %v1117_v41 = vld [vmem:[#allocation2 + $0x8] sm:$0x1f] }
 0x108   : > { %3766 = vmatprep.subr.bf16.mxu1 %v4322_v40  ;;  %3818 = vmatprep.subr.bf16.mxu0 %v4325_v43 }
 0x109   : > { %3963 = vmatmul.mubr.bf16.gmra.mrb[8].mxu0 %v4301_v20  ;;  %3979 = vmatmul.mubr.bf16.gmra.mrb[8].mxu1 %v4302_v21 }
 0x10a   : > { %3966 = vmatprep.mubr.bf16.mxu0 %v4303_v22  ;;  %3982 = vmatprep.mubr.bf16.mxu1 %v4304_v23 }
 0x10b   : > { %3767 = vmatpush3.bf16.msra.mxu1 %v4324_v42  ;;  %3819 = vmatpush3.bf16.msra.mxu0 %v4327_v45 }
 0x10c   : > { %3768 = vmatprep.subr.bf16.mxu1 %v4326_v44  ;;  %3820 = vmatprep.subr.bf16.mxu0 %v4329_v47  ;;  %v1316_v47 = vld [vmem:[#allocation2 + $0xa8] sm:$0x1f] }
 0x10f   : > { %3769 = vmatpush3.bf16.msra.mxu1 %v4328_v46  ;;  %3821 = vmatpush3.bf16.msra.mxu0 %v4331_v49 }
 0x110   : > { %3770 = vmatprep.subr.bf16.mxu1 %v4330_v48  ;;  %3822 = vmatprep.subr.bf16.mxu0 %v4333_v51 }
 0x111   : > { %3967 = vmatmul.mubr.bf16.gmra.mrb[12].mxu0 %v4305_v24  ;;  %3983 = vmatmul.mubr.bf16.gmra.mrb[12].mxu1 %v4306_v25 }
 0x113   : > { %3771 = vmatpush3.bf16.msra.mxu1 %v4332_v50  ;;  %3823 = vmatpush3.bf16.msra.mxu0 %v4335_v53 }
 0x114   : > { %3772 = vmatprep.subr.bf16.mxu1 %v4334_v52  ;;  %3824 = vmatprep.subr.bf16.mxu0 %v4337_v55 }
 0x117   : > { %3773 = vmatpush3.bf16.msra.mxu1 %v4336_v54  ;;  %3825 = vmatpush3.bf16.msra.mxu0 %v4339_v57  ;;  %v1310_v57 = vld [vmem:[#allocation2 + $0x98] sm:$0x1f] }
 0x118   : > { %3986 = vmatprep.subr.bf16.mxu1 %v5054_v56  ;;  %3862 = vmatprep.subr.bf16.mxu0 %v4342_v58 }
 0x1cc   : > { %v3956_v62 = vpop.f32.mrb[0].mxu0  ;;  %v3972_v63 = vpop.f32.mrb[0].mxu1 }
 0x1cd   : > { %v719_v0 = vadd.f32 %v3956_v62, %v5062_v60  ;;  %v783_v1 = vadd.f32 %v3972_v63, %v5062_v60  ;;  %v710_v2 = vpop.f32.mrb[1].mxu0  ;;  %v774_v3 = vpop.f32.mrb[1].mxu1 }
 0x1ce   : > { %v711_v4 = vadd.f32 %v5062_v60, %v710_v2  ;;  %v775_v5 = vadd.f32 %v5062_v60, %v774_v3  ;;  %v3957_v6 = vpop.f32.mrb[2].mxu0  ;;  %v3973_v7 = vpop.f32.mrb[2].mxu1 }
 0x1cf   : > { %v839_v10 = vmax.f32 %v719_v0, 0.0  ;;  %v855_v11 = vmax.f32 %v783_v1, 0.0  ;;  %v722_v12 = vadd.f32 %v3957_v6, %v5062_v60  ;;  %v786_v13 = vadd.f32 %v3973_v7, %v5062_v60  ;;  %v713_v14 = vpop.f32.mrb[3].mxu0  ;;  %v777_v15 = vpop.f32.mrb[3].mxu1 }
 0x1d0   : > { %v837_v16 = vmax.f32 %v711_v4, 0.0  ;;  %v853_v17 = vmax.f32 %v775_v5, 0.0  ;;  %v714_v18 = vadd.f32 %v5062_v60, %v713_v14  ;;  %v778_v19 = vadd.f32 %v5062_v60, %v777_v15 }
 0x1d1   : > { %v3672_v20 = vpack.c.bf16 %v839_v10, %v839_v10  ;;  %v3688_v21 = vpack.c.bf16 %v855_v11, %v855_v11  ;;  %v840_v22 = vmax.f32 %v722_v12, 0.0  ;;  %v856_v23 = vmax.f32 %v786_v13, 0.0  ;;  %v1126_v12 = vld [vmem:[#allocation2 + $0x20] sm:$0x1f] }
 0x1d2   : > { %v3670_v24 = vpack.c.bf16 %v837_v16, %v837_v16  ;;  %v3686_v25 = vpack.c.bf16 %v853_v17, %v853_v17  ;;  %v838_v26 = vmax.f32 %v714_v18, 0.0  ;;  %v854_v27 = vmax.f32 %v778_v19, 0.0  ;;  %v1319_v16 = vld [vmem:[#allocation2 + $0xb0] sm:$0x1f] }
 0x1d3   : > { %v1000_v28 = vshrl.u32 %v3672_v20, 16  ;;  %v1003_v29 = vshll.u32 %v3672_v20, 16  ;;  %v1196_v30 = vshrl.u32 %v3688_v21, 16  ;;  %v1199_v31 = vshll.u32 %v3688_v21, 16  ;;  %v1120_v21 = vld [vmem:[#allocation2 + $0x10] sm:$0x1f] }
 0x1d4   : > { %v986_v33 = vshrl.u32 %v3670_v24, 16  ;;  %v989_v34 = vshll.u32 %v3670_v24, 16  ;;  %v1182_v35 = vshrl.u32 %v3686_v25, 16  ;;  %v1185_v36 = vshll.u32 %v3686_v25, 16  ;;  %v3960_v37 = vpop.f32.mrb[4].mxu0  ;;  %v3976_v38 = vpop.f32.mrb[4].mxu1 }
 0x1d5   : > { %v1002_v39 = vrot.slane %v1000_v28, 7  ;;  %v1198_v40 = vrot.slane %v1196_v30, 7  ;;  %v3673_v42 = vpack.c.bf16 %v840_v22, %v840_v22  ;;  %v3689_v43 = vpack.c.bf16 %v856_v23, %v856_v23  ;;  %v726_v44 = vpop.f32.mrb[5].mxu0  ;;  %v790_v45 = vpop.f32.mrb[5].mxu1  ;;  %v1313_v30 = vld [vmem:[#allocation2 + $0xa0] sm:$0x1f] }
 0x1d6   : > { %v988_v48 = vrot.slane %v986_v33, 7  ;;  %v1184_v49 = vrot.slane %v1182_v35, 7  ;;  %v3671_v50 = vpack.c.bf16 %v838_v26, %v838_v26  ;;  %v3687_v51 = vpack.c.bf16 %v854_v27, %v854_v27  ;;  %v3961_v52 = vpop.f32.mrb[6].mxu0  ;;  %v3977_v53 = vpop.f32.mrb[6].mxu1 }
 0x1d7   : > { %v1005_v54 = vor.u32 %v1003_v29, %v1002_v39  ;;  %v1201_v55 = vor.u32 %v1199_v31, %v1198_v40  ;;  %v1007_v58 = vshrl.u32 %v3673_v42, 16  ;;  %v1010_v61 = vshll.u32 %v3673_v42, 16  ;;  %v729_v62 = vpop.f32.mrb[7].mxu0  ;;  %v5082_v63 = vpop.f32.mrb[7].mxu1 }
 0x1d8   : > { %v991_v0 = vor.u32 %v989_v34, %v988_v48  ;;  %v1187_v1 = vor.u32 %v1185_v36, %v1184_v49  ;;  %v1203_v2 = vshrl.u32 %v3689_v43, 16  ;;  %v1206_v3 = vshll.u32 %v3689_v43, 16 }
 0x1d9   : > { %v1124_v4 = vsel %vm5078_vm2, %v1005_v54, %v1123_v32  ;;  %v1317_v5 = vsel %vm5078_vm2, %v1201_v55, %v1316_v47  ;;  %v1009_v6 = vrot.slane %v1007_v58, 7  ;;  %v993_v7 = vshrl.u32 %v3671_v50, 16 }
 0x1da   : > { %1125 = vst [vmem:[#allocation2 + $0x18] sm:$0x1f] %v1124_v4  ;;  %1318 = vst [vmem:[#allocation2 + $0xa8] sm:$0x1f] %v1317_v5  ;;  %v1118_v10 = vsel %vm5078_vm2, %v991_v0, %v1117_v41  ;;  %v1311_v11 = vsel %vm5078_vm2, %v1187_v1, %v1310_v57  ;;  %v1205_v13 = vrot.slane %v1203_v2, 7  ;;  %v996_v14 = vshll.u32 %v3671_v50, 16 }
 0x1db   : > { %1119 = vst [vmem:[#allocation2 + $0x8] sm:$0x1f] %v1118_v10  ;;  %1312 = vst [vmem:[#allocation2 + $0x98] sm:$0x1f] %v1311_v11  ;;  %v1012_v15 = vor.u32 %v1010_v61, %v1009_v6  ;;  %v995_v17 = vrot.slane %v993_v7, 7  ;;  %v1189_v18 = vshrl.u32 %v3687_v51, 16  ;;  %v735_v22 = vadd.f32 %v3960_v37, %v5062_v60 }
 0x1dc   : > { %v1192_v19 = vshll.u32 %v3687_v51, 16  ;;  %v1208_v20 = vor.u32 %v1206_v3, %v1205_v13  ;;  %v799_v23 = vadd.f32 %v3976_v38, %v5062_v60  ;;  %v727_v24 = vadd.f32 %v5062_v60, %v726_v44  ;;  %v5095_v25 = vpop.f32.mrb[8].mxu0  ;;  %v5097_v26 = vpop.f32.mrb[8].mxu1  ;;  %v1135_v1 = vld [vmem:[#allocation2 + $0x38] sm:$0x1f] }
 0x1dd   : > { %v1127_v27 = vsel %vm5078_vm2, %v1012_v15, %v1126_v12  ;;  %v998_v28 = vor.u32 %v996_v14, %v995_v17  ;;  %v1191_v29 = vrot.slane %v1189_v18, 7  ;;  %v791_v31 = vadd.f32 %v5062_v60, %v790_v45  ;;  %v5102_v32 = vpop.f32.mrb[9].mxu0  ;;  %v5104_v33 = vpop.f32.mrb[9].mxu1  ;;  %v1328_v2 = vld [vmem:[#allocation2 + $0xc8] sm:$0x1f] }
 0x1de   : > { %1128 = vst [vmem:[#allocation2 + $0x20] sm:$0x1f] %v1127_v27  ;;  %v1320_v34 = vsel %vm5078_vm2, %v1208_v20, %v1319_v16  ;;  %v843_v35 = vmax.f32 %v735_v22, 0.0  ;;  %v859_v36 = vmax.f32 %v799_v23, 0.0  ;;  %v841_v37 = vmax.f32 %v727_v24, 0.0  ;;  %v5108_v38 = vpop.f32.mrb[10].mxu0 }
 0x1df   : > { %v5110_v39 = vpop.f32.mrb[10].mxu1  ;;  %1321 = vst [vmem:[#allocation2 + $0xb0] sm:$0x1f] %v1320_v34  ;;  %v1121_v40 = vsel %vm5078_vm2, %v998_v28, %v1120_v21  ;;  %v1194_v41 = vor.u32 %v1192_v19, %v1191_v29  ;;  %v857_v42 = vmax.f32 %v791_v31, 0.0  ;;  %v738_v43 = vadd.f32 %v3961_v52, %v5062_v60  ;;  %v5115_v44 = vpop.f32.mrb[11].mxu0 }
 0x1e0   : > { %v5117_v45 = vpop.f32.mrb[11].mxu1  ;;  %1122 = vst [vmem:[#allocation2 + $0x10] sm:$0x1f] %v1121_v40  ;;  %v3676_v47 = vpack.c.bf16 %v843_v35, %v843_v35  ;;  %v3692_v48 = vpack.c.bf16 %v859_v36, %v859_v36  ;;  %v3674_v49 = vpack.c.bf16 %v841_v37, %v841_v37  ;;  %v802_v50 = vadd.f32 %v3977_v53, %v5062_v60  ;;  %v1129_v10 = vld [vmem:[#allocation2 + $0x28] sm:$0x1f] }
 0x1e1   : > { %v1314_v51 = vsel %vm5078_vm2, %v1194_v41, %v1313_v30  ;;  %v3690_v54 = vpack.c.bf16 %v857_v42, %v857_v42  ;;  %v844_v55 = vmax.f32 %v738_v43, 0.0  ;;  %v730_v57 = vadd.f32 %v5062_v60, %v729_v62  ;;  %v1322_v22 = vld [vmem:[#allocation2 + $0xb8] sm:$0x1f] }
 0x1e2   : > { %1315 = vst [vmem:[#allocation2 + $0xa0] sm:$0x1f] %v1314_v51  ;;  %v1028_v58 = vshrl.u32 %v3676_v47, 16  ;;  %v1031_v52 = vshll.u32 %v3676_v47, 16  ;;  %v1224_v61 = vshrl.u32 %v3692_v48, 16  ;;  %v1227_v0 = vshll.u32 %v3692_v48, 16 }
 0x1e3   : > { %v1014_v3 = vshrl.u32 %v3674_v49, 16  ;;  %v1017_v4 = vshll.u32 %v3674_v49, 16  ;;  %v1210_v5 = vshrl.u32 %v3690_v54, 16  ;;  %v1213_v6 = vshll.u32 %v3690_v54, 16  ;;  %v1138_v47 = vld [vmem:[#allocation2 + $0x40] sm:$0x1f] }
 0x1e4   : > { %v1030_v7 = vrot.slane %v1028_v58, 7  ;;  %v1226_v53 = vrot.slane %v1224_v61, 7  ;;  %v3677_v11 = vpack.c.bf16 %v844_v55, %v844_v55  ;;  %v860_v12 = vmax.f32 %v802_v50, 0.0  ;;  %v5123_v13 = vpop.f32.mrb[12].mxu0  ;;  %v5125_v14 = vpop.f32.mrb[12].mxu1 }
 0x1e5   : > { %v1016_v62 = vrot.slane %v1014_v3, 7  ;;  %v1212_v15 = vrot.slane %v1210_v5, 7  ;;  %v842_v16 = vmax.f32 %v730_v57, 0.0  ;;  %v794_v17 = vadd.f32 %v5062_v60, %v5082_v63  ;;  %v5129_v18 = vpop.f32.mrb[13].mxu0  ;;  %v5131_v19 = vpop.f32.mrb[13].mxu1 }
 0x1e6   : > { %v1033_v20 = vor.u32 %v1031_v52, %v1030_v7  ;;  %v1229_v21 = vor.u32 %v1227_v0, %v1226_v53  ;;  %v1035_v23 = vshrl.u32 %v3677_v11, 16  ;;  %v1038_v24 = vshll.u32 %v3677_v11, 16  ;;  %v5133_v27 = vpop.f32.mrb[14].mxu0  ;;  %v5135_v28 = vpop.f32.mrb[14].mxu1  ;;  %v1331_v58 = vld [vmem:[#allocation2 + $0xd0] sm:$0x1f] }
 0x1e7   : > { %v1019_v29 = vor.u32 %v1017_v4, %v1016_v62  ;;  %v1215_v30 = vor.u32 %v1213_v6, %v1212_v15  ;;  %v3693_v31 = vpack.c.bf16 %v860_v12, %v860_v12  ;;  %v3675_v34 = vpack.c.bf16 %v842_v16, %v842_v16  ;;  %v5137_v35 = vpop.f32.mrb[15].mxu0  ;;  %v5139_v63 = vpop.f32.mrb[15].mxu1  ;;  %v1132_v6 = vld [vmem:[#allocation2 + $0x30] sm:$0x1f]  ;;  %v1325_v62 = vld [vmem:[#allocation2 + $0xc0] sm:$0x1f] }
 0x1e8   : > { %v1136_v36 = vsel %vm5078_vm2, %v1033_v20, %v1135_v1  ;;  %v1329_v37 = vsel %vm5078_vm2, %v1229_v21, %v1328_v2  ;;  %v1037_v40 = vrot.slane %v1035_v23, 7  ;;  %v858_v41 = vmax.f32 %v794_v17, 0.0 }
 0x1e9   : > { %1137 = vst [vmem:[#allocation2 + $0x38] sm:$0x1f] %v1136_v36  ;;  %1330 = vst [vmem:[#allocation2 + $0xc8] sm:$0x1f] %v1329_v37  ;;  %v1130_v42 = vsel %vm5078_vm2, %v1019_v29, %v1129_v10  ;;  %v1323_v43 = vsel %vm5078_vm2, %v1215_v30, %v1322_v22  ;;  %v1231_v48 = vshrl.u32 %v3693_v31, 16  ;;  %v1234_v49 = vshll.u32 %v3693_v31, 16 }
 0x1ea   : > { %1131 = vst [vmem:[#allocation2 + $0x28] sm:$0x1f] %v1130_v42  ;;  %1324 = vst [vmem:[#allocation2 + $0xb8] sm:$0x1f] %v1323_v43  ;;  %v1040_v50 = vor.u32 %v1038_v24, %v1037_v40  ;;  %v1021_v51 = vshrl.u32 %v3675_v34, 16  ;;  %v1024_v54 = vshll.u32 %v3675_v34, 16  ;;  %v3691_v55 = vpack.c.bf16 %v858_v41, %v858_v41 }
 0x1eb   : > { %v1233_v57 = vrot.slane %v1231_v48, 7  ;;  %v751_v52 = vadd.f32 %v5095_v25, %v5062_v60  ;;  %v815_v61 = vadd.f32 %v5097_v26, %v5062_v60  ;;  %v743_v0 = vadd.f32 %v5062_v60, %v5102_v32  ;;  %v1147_v40 = vld [vmem:[#allocation2 + $0x58] sm:$0x1f] }
 0x1ec   : > { %v1139_v1 = vsel %vm5078_vm2, %v1040_v50, %v1138_v47  ;;  %v1023_v2 = vrot.slane %v1021_v51, 7  ;;  %v1217_v3 = vshrl.u32 %v3691_v55, 16  ;;  %v1220_v4 = vshll.u32 %v3691_v55, 16  ;;  %v1340_v47 = vld [vmem:[#allocation2 + $0xe8] sm:$0x1f] }
 0x1ed   : > { %1140 = vst [vmem:[#allocation2 + $0x40] sm:$0x1f] %v1139_v1  ;;  %v1236_v5 = vor.u32 %v1234_v49, %v1233_v57  ;;  %v847_v7 = vmax.f32 %v751_v52, 0.0  ;;  %v863_v53 = vmax.f32 %v815_v61, 0.0  ;;  %v845_v10 = vmax.f32 %v743_v0, 0.0 }
 0x1ee   : > { %v1026_v11 = vor.u32 %v1024_v54, %v1023_v2  ;;  %v1219_v25 = vrot.slane %v1217_v3, 7  ;;  %v807_v26 = vadd.f32 %v5062_v60, %v5104_v33  ;;  %v754_v32 = vadd.f32 %v5108_v38, %v5062_v60  ;;  %v1141_v57 = vld [vmem:[#allocation2 + $0x48] sm:$0x1f]  ;;  %v1334_v1 = vld [vmem:[#allocation2 + $0xd8] sm:$0x1f] }
 0x1ef   : > { %v1332_v12 = vsel %vm5078_vm2, %v1236_v5, %v1331_v58  ;;  %v3680_v15 = vpack.c.bf16 %v847_v7, %v847_v7  ;;  %v3696_v16 = vpack.c.bf16 %v863_v53, %v863_v53  ;;  %v3678_v17 = vpack.c.bf16 %v845_v10, %v845_v10  ;;  %v1150_v53 = vld [vmem:[#allocation2 + $0x60] sm:$0x1f] }
 0x1f0   : > { %1333 = vst [vmem:[#allocation2 + $0xd0] sm:$0x1f] %v1332_v12  ;;  %v1133_v20 = vsel %vm5078_vm2, %v1026_v11, %v1132_v6  ;;  %v1222_v21 = vor.u32 %v1220_v4, %v1219_v25  ;;  %v861_v22 = vmax.f32 %v807_v26, 0.0  ;;  %v848_v23 = vmax.f32 %v754_v32, 0.0 }
 0x1f1   : > { %1134 = vst [vmem:[#allocation2 + $0x30] sm:$0x1f] %v1133_v20  ;;  %v1056_v24 = vshrl.u32 %v3680_v15, 16  ;;  %v1059_v33 = vshll.u32 %v3680_v15, 16  ;;  %v1252_v29 = vshrl.u32 %v3696_v16, 16  ;;  %v1255_v30 = vshll.u32 %v3696_v16, 16 }
 0x1f2   : > { %v1326_v38 = vsel %vm5078_vm2, %v1222_v21, %v1325_v62  ;;  %v1042_v31 = vshrl.u32 %v3678_v17, 16  ;;  %v1045_v34 = vshll.u32 %v3678_v17, 16  ;;  %v3694_v36 = vpack.c.bf16 %v861_v22, %v861_v22 }
 0x1f3   : > { %1327 = vst [vmem:[#allocation2 + $0xc0] sm:$0x1f] %v1326_v38  ;;  %v1058_v37 = vrot.slane %v1056_v24, 7  ;;  %v1254_v41 = vrot.slane %v1252_v29, 7  ;;  %v3681_v42 = vpack.c.bf16 %v848_v23, %v848_v23  ;;  %v818_v43 = vadd.f32 %v5110_v39, %v5062_v60  ;;  %v1144_v29 = vld [vmem:[#allocation2 + $0x50] sm:$0x1f] }
 0x1f4   : > { %v1044_v48 = vrot.slane %v1042_v31, 7  ;;  %v1238_v49 = vshrl.u32 %v3694_v36, 16  ;;  %v1241_v50 = vshll.u32 %v3694_v36, 16  ;;  %v746_v51 = vadd.f32 %v5062_v60, %v5115_v44 }
 0x1f5   : > { %v1061_v54 = vor.u32 %v1059_v33, %v1058_v37  ;;  %v1257_v55 = vor.u32 %v1255_v30, %v1254_v41  ;;  %v1063_v58 = vshrl.u32 %v3681_v42, 16  ;;  %v1066_v52 = vshll.u32 %v3681_v42, 16  ;;  %v1343_v33 = vld [vmem:[#allocation2 + $0xf0] sm:$0x1f] }
 0x1f6   : > { %v1047_v61 = vor.u32 %v1045_v34, %v1044_v48  ;;  %v1240_v0 = vrot.slane %v1238_v49, 7  ;;  %v864_v2 = vmax.f32 %v818_v43, 0.0  ;;  %v846_v3 = vmax.f32 %v746_v51, 0.0 }
 0x1f7   : > { %v1148_v39 = vsel %vm5078_vm2, %v1061_v54, %v1147_v40  ;;  %v1341_v4 = vsel %vm5078_vm2, %v1257_v55, %v1340_v47  ;;  %v1065_v5 = vrot.slane %v1063_v58, 7  ;;  %v810_v44 = vadd.f32 %v5062_v60, %v5117_v45 }
 0x1f8   : > { %1149 = vst [vmem:[#allocation2 + $0x58] sm:$0x1f] %v1148_v39  ;;  %1342 = vst [vmem:[#allocation2 + $0xe8] sm:$0x1f] %v1341_v4  ;;  %v1142_v6 = vsel %vm5078_vm2, %v1047_v61, %v1141_v57  ;;  %v1243_v7 = vor.u32 %v1241_v50, %v1240_v0  ;;  %v3697_v10 = vpack.c.bf16 %v864_v2, %v864_v2  ;;  %v1337_v50 = vld [vmem:[#allocation2 + $0xe0] sm:$0x1f] }
 0x1f9   : > { %v3679_v11 = vpack.c.bf16 %v846_v3, %v846_v3  ;;  %1143 = vst [vmem:[#allocation2 + $0x48] sm:$0x1f] %v1142_v6  ;;  %v1068_v25 = vor.u32 %v1066_v52, %v1065_v5  ;;  %v862_v26 = vmax.f32 %v810_v44, 0.0  ;;  %v767_v32 = vadd.f32 %v5123_v13, %v5062_v60  ;;  %v1159_v52 = vld [vmem:[#allocation2 + $0x78] sm:$0x1f] }
 0x1fa   : > { %v831_v12 = vadd.f32 %v5125_v14, %v5062_v60  ;;  %v1335_v45 = vsel %vm5078_vm2, %v1243_v7, %v1334_v1  ;;  %v1259_v62 = vshrl.u32 %v3697_v10, 16  ;;  %v1262_v15 = vshll.u32 %v3697_v10, 16  ;;  %v1352_v4 = vld [vmem:[#allocation2 + $0x108] sm:$0x1f] }
 0x1fb   : > { %v1049_v16 = vshrl.u32 %v3679_v11, 16  ;;  %1336 = vst [vmem:[#allocation2 + $0xd8] sm:$0x1f] %v1335_v45  ;;  %v1151_v17 = vsel %vm5078_vm2, %v1068_v25, %v1150_v53  ;;  %v1052_v20 = vshll.u32 %v3679_v11, 16  ;;  %v3695_v21 = vpack.c.bf16 %v862_v26, %v862_v26  ;;  %v1583_v26 = vld [vmem:[#allocation2 + $0x8] sm:$0x1f] }
 0x1fc   : > { %v851_v22 = vmax.f32 %v767_v32, 0.0  ;;  %1152 = vst [vmem:[#allocation2 + $0x60] sm:$0x1f] %v1151_v17  ;;  %v1261_v23 = vrot.slane %v1259_v62, 7  ;;  %v867_v13 = vmax.f32 %v831_v12, 0.0  ;;  %v759_v14 = vadd.f32 %v5062_v60, %v5129_v18 }
 0x1fd   : > { %v1051_v24 = vrot.slane %v1049_v16, 7  ;;  %v1245_v30 = vshrl.u32 %v3695_v21, 16  ;;  %v1248_v38 = vshll.u32 %v3695_v21, 16  ;;  %v823_v34 = vadd.f32 %v5062_v60, %v5131_v19  ;;  %v1153_v32 = vld [vmem:[#allocation2 + $0x68] sm:$0x1f] }
 0x1fe   : > { %v3684_v31 = vpack.c.bf16 %v851_v22, %v851_v22  ;;  %v1264_v36 = vor.u32 %v1262_v15, %v1261_v23  ;;  %v3700_v40 = vpack.c.bf16 %v867_v13, %v867_v13  ;;  %v849_v41 = vmax.f32 %v759_v14, 0.0  ;;  %v1346_v16 = vld [vmem:[#allocation2 + $0xf8] sm:$0x1f] }
 0x1ff   : > { %v1054_v37 = vor.u32 %v1052_v20, %v1051_v24  ;;  %v1247_v42 = vrot.slane %v1245_v30, 7  ;;  %v865_v48 = vmax.f32 %v823_v34, 0.0  ;;  %v770_v0 = vadd.f32 %v5133_v27, %v5062_v60  ;;  %v1584_v13 = vld [vmem:[#allocation2 + $0x18] sm:$0x1f] }
 0x200   : > { %v1084_v43 = vshrl.u32 %v3684_v31, 16  ;;  %v1087_v47 = vshll.u32 %v3684_v31, 16  ;;  %v1344_v49 = vsel %vm5078_vm2, %v1264_v36, %v1343_v33  ;;  %v1280_v51 = vshrl.u32 %v3700_v40, 16  ;;  %v1368_v36 = vld [vmem:[#allocation2 + $0x10] sm:$0x1f] }
 0x201   : > { %v1145_v18 = vsel %vm5078_vm2, %v1054_v37, %v1144_v29  ;;  %v1283_v54 = vshll.u32 %v3700_v40, 16  ;;  %1345 = vst [vmem:[#allocation2 + $0xf0] sm:$0x1f] %v1344_v49  ;;  %v1250_v19 = vor.u32 %v1248_v38, %v1247_v42  ;;  %v3682_v57 = vpack.c.bf16 %v849_v41, %v849_v41  ;;  %v1162_v29 = vld [vmem:[#allocation2 + $0x80] sm:$0x1f] }
 0x202   : > { %1146 = vst [vmem:[#allocation2 + $0x50] sm:$0x1f] %v1145_v18  ;;  %v1086_v55 = vrot.slane %v1084_v43, 7  ;;  %v3698_v58 = vpack.c.bf16 %v865_v48, %v865_v48  ;;  %v1282_v61 = vrot.slane %v1280_v51, 7  ;;  %v834_v1 = vadd.f32 %v5135_v28, %v5062_v60  ;;  %v1586_v18 = vld [vmem:[#allocation2 + $0x38] sm:$0x1f] }
 0x203   : > { %v762_v2 = vadd.f32 %v5062_v60, %v5137_v35  ;;  %v1338_v3 = vsel %vm5078_vm2, %v1250_v19, %v1337_v50  ;;  %v1070_v5 = vshrl.u32 %v3682_v57, 16  ;;  %v1073_v44 = vshll.u32 %v3682_v57, 16  ;;  %v1369_v50 = vld [vmem:[#allocation2 + $0x20] sm:$0x1f]  ;;  %v1585_v57 = vld [vmem:[#allocation2 + $0x28] sm:$0x1f] }
 0x204   : > { %v1089_v39 = vor.u32 %v1087_v47, %v1086_v55  ;;  %1339 = vst [vmem:[#allocation2 + $0xe0] sm:$0x1f] %v1338_v3  ;;  %v1285_v6 = vor.u32 %v1283_v54, %v1282_v61  ;;  %v1266_v7 = vshrl.u32 %v3698_v58, 16  ;;  %v1269_v53 = vshll.u32 %v3698_v58, 16  ;;  %v1349_v3 = vld [vmem:[#allocation2 + $0x100] sm:$0x1f] }
 0x205   : > { %v852_v10 = vmax.f32 %v770_v0, 0.0  ;;  %v1072_v11 = vrot.slane %v1070_v5, 7  ;;  %v868_v28 = vmax.f32 %v834_v1, 0.0  ;;  %v850_v25 = vmax.f32 %v762_v2, 0.0 }
 0x206   : > { %v1160_v27 = vsel %vm5078_vm2, %v1089_v39, %v1159_v52  ;;  %v1353_v35 = vsel %vm5078_vm2, %v1285_v6, %v1352_v4  ;;  %v1268_v12 = vrot.slane %v1266_v7, 7  ;;  %v826_v62 = vadd.f32 %v5062_v60, %v5139_v63 }
 0x207   : > { %1161 = vst [vmem:[#allocation2 + $0x78] sm:$0x1f] %v1160_v27  ;;  %v3685_v45 = vpack.c.bf16 %v852_v10, %v852_v10  ;;  %1354 = vst [vmem:[#allocation2 + $0x108] sm:$0x1f] %v1353_v35  ;;  %v1075_v15 = vor.u32 %v1073_v44, %v1072_v11  ;;  %v3701_v17 = vpack.c.bf16 %v868_v28, %v868_v28  ;;  %v1600_v14 = vshrl.u32 %v1583_v26, 16 }
 0x208   : > { %v3683_v20 = vpack.c.bf16 %v850_v25, %v850_v25  ;;  %v5212_v21 = vor.u32 %v5070_v9, %v1384_v8  ;;  %v1271_v22 = vor.u32 %v1269_v53, %v1268_v12  ;;  %v866_v24 = vmax.f32 %v826_v62, 0.0  ;;  %v1355_v8 = vld [vmem:[#allocation2 + $0x110] sm:$0x1f]  ;;  %v4340_v10 = vld [vmem:[#allocation2 + $0x98] ss:$16 sps:$4 sm:$0xff]  }
 0x209   : > { %v1091_v23 = vshrl.u32 %v3685_v45, 16  ;;  %v1154_v33 = vsel %vm5078_vm2, %v1075_v15, %v1153_v32  ;;  %v1287_v60 = vshrl.u32 %v3701_v17, 16  ;;  %v1290_v63 = vshll.u32 %v3701_v17, 16  ;;  %v1156_v9 = vld [vmem:[#allocation2 + $0x70] sm:$0x1f]  ;;  %v4343_v12 = vld [vmem:[#allocation9 + $0x148] sm:$0xff]  }
 0x20a   : > { %v1077_v30 = vshrl.u32 %v3683_v20, 16  ;;  %1155 = vst [vmem:[#allocation2 + $0x68] sm:$0x1f] %v1154_v33  ;;  %v1347_v38 = vsel %vm5078_vm2, %v1271_v22, %v1346_v16  ;;  %v1094_v31 = vshll.u32 %v3685_v45, 16  ;;  %v3699_v34 = vpack.c.bf16 %v866_v24, %v866_v24  ;;  %v1370_v53 = vld [vmem:[#allocation2 + $0x30] sm:$0x1f] }
 0x20b   : > { %v1093_v59 = vrot.slane %v1091_v23, 7  ;;  %1348 = vst [vmem:[#allocation2 + $0xf8] sm:$0x1f] %v1347_v38  ;;  %v1289_v37 = vrot.slane %v1287_v60, 7  ;;  %v1080_v41 = vshll.u32 %v3683_v20, 16  ;;  %v1602_v42 = vshll.u32 %v1583_v26, 16 }
 0x20c   : > { %v1079_v40 = vrot.slane %v1077_v30, 7  ;;  %v1273_v47 = vshrl.u32 %v3699_v34, 16  ;;  %v1276_v48 = vshll.u32 %v3699_v34, 16  ;;  %v1609_v49 = vshll.u32 %v1584_v13, 16  ;;  %v1587_v25 = vld [vmem:[#allocation2 + $0x48] sm:$0x1f] }
 0x20d   : > { %v1096_v43 = vor.u32 %v1094_v31, %v1093_v59  ;;  %v1292_v51 = vor.u32 %v1290_v63, %v1289_v37  ;;  %v1604_v19 = vrot.slane %v1602_v42, 1  ;;  %v1607_v55 = vshrl.u32 %v1584_v13, 16  ;;  %v1371_v62 = vld [vmem:[#allocation2 + $0x40] sm:$0x1f]  ;;  %v1588_v22 = vld [vmem:[#allocation2 + $0x58] sm:$0x1f] }
 0x20e   : > { %v1082_v54 = vor.u32 %v1080_v41, %v1079_v40  ;;  %v1275_v52 = vrot.slane %v1273_v47, 7  ;;  %v1611_v61 = vrot.slane %v1609_v49, 1  ;;  %v1393_v0 = vshll.u32 %v1368_v36, 16  ;;  %v4344_v24 = vld [vmem:[#allocation9 + $0x180] sm:$0xff]   ;;  %v1372_v46 = vld [vmem:[#allocation2 + $0x50] sm:$0x1f] }
 0x20f   : > { %v1163_v58 = vsel %vm5078_vm2, %v1096_v43, %v1162_v29  ;;  %v1356_v1 = vsel %vm5078_vm2, %v1292_v51, %v1355_v8  ;;  %v1605_v39 = vor.u32 %v1604_v19, %v1600_v14  ;;  %v1391_v4 = vshrl.u32 %v1368_v36, 16  ;;  %v4341_v29 = vld [vmem:[#allocation2 + $0x90] ss:$16 sps:$4 sm:$0xff]   ;;  %v4345_v60 = vld [vmem:[#allocation9 + $0x1c8] sm:$0xff]   ;;  %v1590_v43 = vld [vmem:[#allocation2 + $0x78] sm:$0x1f] }
 0x210   : > { %1164 = vst [vmem:[#allocation2 + $0x80] sm:$0x1f] %v1163_v58  ;;  %v1157_v2 = vsel %vm5078_vm2, %v1082_v54, %v1156_v9  ;;  %1357 = vst [vmem:[#allocation2 + $0x110] sm:$0x1f] %v1356_v1  ;;  %v1278_v5 = vor.u32 %v1276_v48, %v1275_v52  ;;  %v1612_v44 = vor.u32 %v1611_v61, %v1607_v55  ;;  %v1395_v6 = vrot.slane %v1393_v0, 1  ;;  %v4346_v37 = vld [vmem:[#allocation9 + $0x150] sm:$0xff]  }
 0x211   : > { %1158 = vst [vmem:[#allocation2 + $0x70] sm:$0x1f] %v1157_v2  ;;  %v1616_v7 = vshll.u32 %v1585_v57, 16  ;;  %v1614_v27 = vshrl.u32 %v1585_v57, 16  ;;  %v1623_v11 = vshll.u32 %v1586_v18, 16  ;;  %v1400_v28 = vshll.u32 %v1369_v50, 16 }
 0x212   : > { %v1350_v26 = vsel %vm5078_vm2, %v1278_v5, %v1349_v3  ;;  %v3525_v35 = vcombine.low %v1605_v39, %v1612_v44  ;;  %v1396_v32 = vor.u32 %v1395_v6, %v1391_v4  ;;  %v1621_v15 = vshrl.u32 %v1586_v18, 16  ;;  %v4347_v47 = vld [vmem:[#allocation9 + $0x188] sm:$0xff]   ;;  %v4350_v54 = vld [vmem:[#allocation9 + $0x1d0] sm:$0xff]   ;;  %v5228_v61 = vld [vmem:[#allocation2 + $0x98] sm:$0x1f] }
 0x213   : > { %v1618_v45 = vrot.slane %v1616_v7, 1  ;;  %1351 = vst [vmem:[#allocation2 + $0x100] sm:$0x1f] %v1350_v26  ;;  %v1625_v16 = vrot.slane %v1623_v11, 1  ;;  %v1402_v17 = vrot.slane %v1400_v28, 1  ;;  %v1407_v20 = vshll.u32 %v1370_v53, 16 }
 0x214   : > { %1991 = vmatprep.mubr.bf16.mxu1 %v3525_v35  ;;  %v3561_v23 = vcombine.low %v5212_v21, %v1396_v32  ;;  %v1398_v14 = vshrl.u32 %v1369_v50, 16  ;;  %v1630_v33 = vshll.u32 %v1587_v25, 16  ;;  %v1405_v30 = vshrl.u32 %v1370_v53, 16  ;;  %v1589_v21 = vld [vmem:[#allocation2 + $0x68] sm:$0x1f]  ;;  %v4351_v1 = vld [vmem:[#allocation9 + $0x158] sm:$0xff]  }
 0x215   : > { %v1619_v13 = vor.u32 %v1618_v45, %v1614_v27  ;;  %1992 = vmatmul.mubr.bf16.vlgmr.msra.gmra.mrb[16].mxu1 %v4340_v10  ;;  %v1626_v63 = vor.u32 %v1625_v16, %v1621_v15  ;;  %v1409_v38 = vrot.slane %v1407_v20, 1  ;;  %v1628_v59 = vshrl.u32 %v1587_v25, 16  ;;  %v4348_v50 = vld [vmem:[#allocation2 + $0xb8] ss:$16 sps:$4 sm:$0xff]   ;;  %v1373_v0 = vld [vmem:[#allocation2 + $0x60] sm:$0x1f] }
 0x216   : > { %3987 = vmatpush3.bf16.msra.mxu1 %v5054_v56  ;;  %2289 = vmatprep.mubr.bf16.mxu0 %v3561_v23  ;;  %v1403_v31 = vor.u32 %v1402_v17, %v1398_v14  ;;  %v1632_v8 = vrot.slane %v1630_v33, 1  ;;  %v1637_v9 = vshll.u32 %v1588_v22, 16  ;;  %v1414_v34 = vshll.u32 %v1371_v62, 16  ;;  %v4352_v5 = vld [vmem:[#allocation9 + $0x190] sm:$0xff]   ;;  %v1592_v10 = vld [vmem:[#allocation2 + $0xa8] sm:$0x1f] }
 0x217   : > { %2290 = vmatmul.mubr.bf16.vlgmr.msra.gmra.mrb[16].mxu0 %v4341_v29  ;;  %3988 = vmatprep.subr.bf16.mxu1 %v4343_v12  ;;  %v3528_v36 = vcombine.low %v1619_v13, %v1626_v63  ;;  %v1410_v40 = vor.u32 %v1409_v38, %v1405_v30  ;;  %v1635_v41 = vshrl.u32 %v1588_v22, 16  ;;  %v1421_v42 = vshll.u32 %v1372_v46, 16  ;;  %v4349_v27 = vld [vmem:[#allocation2 + $0xb0] ss:$16 sps:$4 sm:$0xff]   ;;  %v4353_v11 = vld [vmem:[#allocation9 + $0x1d8] sm:$0xff]   ;;  %v4359_v33 = vld [vmem:[#allocation9 + $0x168] sm:$0xff]  }
 0x218   : > { %3863 = vmatpush3.bf16.msra.mxu0 %v4344_v24  ;;  %v1633_v48 = vor.u32 %v1632_v8, %v1628_v59  ;;  %v1639_v49 = vrot.slane %v1637_v9, 1  ;;  %v1412_v18 = vshrl.u32 %v1371_v62, 16  ;;  %v1416_v56 = vrot.slane %v1414_v34, 1  ;;  %v1374_v4 = vld [vmem:[#allocation2 + $0x70] sm:$0x1f]  ;;  %v4354_v45 = vld [vmem:[#allocation9 + $0x160] sm:$0xff]  }
 0x219   : > { %3864 = vmatprep.subr.bf16.mxu0 %v4345_v60  ;;  %1999 = vmatprep.mubr.bf16.mxu1 %v3528_v36  ;;  %v3564_v51 = vcombine.low %v1403_v31, %v1410_v40  ;;  %v1419_v19 = vshrl.u32 %v1372_v46, 16  ;;  %v1423_v55 = vrot.slane %v1421_v42, 1  ;;  %v1644_v57 = vshll.u32 %v1589_v21, 16  ;;  %v2398_v17 = vld [vmem:[#allocation2 + $0x20] sm:$0x1f]  ;;  %v4355_v20 = vld [vmem:[#allocation9 + $0x198] sm:$0xff]  }
 0x21a   : > { %3989 = vmatpush3.bf16.msra.mxu1 %v4343_v12  ;;  %v1640_v58 = vor.u32 %v1639_v49, %v1635_v41  ;;  %v1651_v52 = vshll.u32 %v1590_v43, 16  ;;  %v1417_v2 = vor.u32 %v1416_v56, %v1412_v18  ;;  %v1642_v6 = vshrl.u32 %v1589_v21, 16  ;;  %v5230_v12 = vld [vmem:[#allocation2 + $0x10] sm:$0x1f]  ;;  %v4358_v13 = vld [vmem:[#allocation9 + $0x1e0] sm:$0xff]   ;;  %v4361_v34 = vld [vmem:[#allocation9 + $0x1e8] sm:$0xff]  }
 0x21b   : > { %3990 = vmatprep.subr.bf16.mxu1 %v4346_v37  ;;  %2297 = vmatprep.mubr.bf16.mxu0 %v3564_v51  ;;  %v1424_v3 = vor.u32 %v1423_v55, %v1419_v19  ;;  %v1646_v39 = vrot.slane %v1644_v57, 1  ;;  %v1649_v7 = vshrl.u32 %v1590_v43, 16  ;;  %v1428_v25 = vshll.u32 %v1373_v0, 16  ;;  %v4360_v46 = vld [vmem:[#allocation9 + $0x1a0] sm:$0xff]   ;;  %v4356_v38 = vld [vmem:[#allocation2 + $0xd8] ss:$16 sps:$4 sm:$0xff]  }
 0x21c   : > { %3865 = vmatpush3.bf16.msra.mxu0 %v4347_v47  ;;  %v3531_v44 = vcombine.low %v1633_v48, %v1640_v58  ;;  %v1653_v53 = vrot.slane %v1651_v52, 1  ;;  %v1435_v32 = vshll.u32 %v1374_v4, 16  ;;  %v1658_v62 = vshll.u32 %v5228_v61, 16  ;;  %v5235_v36 = vld [vmem:[#allocation2 + $0xb8] sm:$0x1f]  ;;  %v4362_v43 = vld [vmem:[#allocation9 + $0x170] sm:$0xff]  }
 0x21d   : > { %2000 = vmatmul.mubr.bf16.gmra.mrb[20].mxu1 %v4348_v50  ;;  %3866 = vmatprep.subr.bf16.mxu0 %v4350_v54  ;;  %v3567_v28 = vcombine.low %v1417_v2, %v1424_v3  ;;  %v1647_v26 = vor.u32 %v1646_v39, %v1642_v6  ;;  %v1665_v15 = vshll.u32 %v1592_v10, 16  ;;  %v1430_v16 = vrot.slane %v1428_v25, 1  ;;  %v4357_v40 = vld [vmem:[#allocation2 + $0xd0] ss:$16 sps:$4 sm:$0xff]   ;;  %v5239_v41 = vld [vmem:[#allocation2 + $0xd8] sm:$0x1f] }
 0x21e   : > { %3991 = vmatpush3.bf16.msra.mxu1 %v4346_v37  ;;  %2007 = vmatprep.mubr.bf16.mxu1 %v3531_v44  ;;  %v1654_v35 = vor.u32 %v1653_v53, %v1649_v7  ;;  %v1426_v22 = vshrl.u32 %v1373_v0, 16  ;;  %v1433_v23 = vshrl.u32 %v1374_v4, 16  ;;  %v1437_v24 = vrot.slane %v1435_v32, 1  ;;  %v5237_v37 = vld [vmem:[#allocation2 + $0xc8] sm:$0x1f]  ;;  %v4367_v2 = vld [vmem:[#allocation9 + $0x178] sm:$0xff]  }
 0x21f   : > { %2298 = vmatmul.mubr.bf16.gmra.mrb[20].mxu0 %v4349_v27  ;;  %3992 = vmatprep.subr.bf16.mxu1 %v4351_v1  ;;  %v2416_v14 = vshll.u32 %v5230_v12, 16  ;;  %v2423_v30 = vshll.u32 %v2398_v17, 16  ;;  %v1656_v59 = vshrl.u32 %v5228_v61, 16  ;;  %v1660_v31 = vrot.slane %v1658_v62, 1  ;;  %v5241_v42 = vld [vmem:[#allocation2 + $0xe8] sm:$0x1f] }
 0x220   : > { %3867 = vmatpush3.bf16.msra.mxu0 %v4352_v5  ;;  %2305 = vmatprep.mubr.bf16.mxu0 %v3567_v28  ;;  %v3534_v29 = vcombine.low %v1647_v26, %v1654_v35  ;;  %v1431_v60 = vor.u32 %v1430_v16, %v1426_v22  ;;  %v1438_v63 = vor.u32 %v1437_v24, %v1433_v23  ;;  %v1663_v8 = vshrl.u32 %v1592_v10, 16  ;;  %v5245_v51 = vld [vmem:[#allocation2 + $0x30] sm:$0x1f]  ;;  %v5247_v54 = vld [vmem:[#allocation2 + $0x40] sm:$0x1f]  ;;  %v4363_v19 = vld [vmem:[#allocation9 + $0x1a8] sm:$0xff]  }
 0x221   : > { %3868 = vmatprep.subr.bf16.mxu0 %v4353_v11  ;;  %v1667_v9 = vrot.slane %v1665_v15, 1  ;;  %v2418_v47 = vrot.slane %v2416_v14, 1  ;;  %v2425_v48 = vrot.slane %v2423_v30, 1  ;;  %v1661_v49 = vor.u32 %v1660_v31, %v1656_v59  ;;  %v4366_v61 = vld [vmem:[#allocation9 + $0x1f0] sm:$0xff]   ;;  %v5257_v44 = vld [vmem:[#allocation2 + $0x108] sm:$0x1f] }
 0x222   : > { %3993 = vmatpush3.bf16.msra.mxu1 %v4351_v1  ;;  %v3570_v21 = vcombine.low %v1431_v60, %v1438_v63  ;;  %v1672_v56 = vshll.u32 %v5235_v36, 16  ;;  %v1679_v50 = vshll.u32 %v5237_v37, 16  ;;  %v2414_v55 = vshrl.u32 %v5230_v12, 16  ;;  %v5253_v1 = vld [vmem:[#allocation2 + $0x90] sm:$0x1f]  ;;  %v4371_v60 = vld [vmem:[#allocation9 + $0x1b8] sm:$0xff]  }
 0x223   : > { %3994 = vmatprep.subr.bf16.mxu1 %v4354_v45  ;;  %v1668_v18 = vor.u32 %v1667_v9, %v1663_v8  ;;  %v2421_v57 = vshrl.u32 %v2398_v17, 16  ;;  %v1686_v58 = vshll.u32 %v5239_v41, 16  ;;  %v1693_v52 = vshll.u32 %v5241_v42, 16  ;;  %v4364_v6 = vld [vmem:[#allocation2 + $0xf8] ss:$16 sps:$4 sm:$0xff]   ;;  %v4368_v53 = vld [vmem:[#allocation9 + $0x1b0] sm:$0xff]  }
 0x224   : > { %3869 = vmatpush3.bf16.msra.mxu0 %v4355_v20  ;;  %v1670_v0 = vshrl.u32 %v5235_v36, 16  ;;  %v2419_v3 = vor.u32 %v2418_v47, %v2414_v55  ;;  %v2430_v4 = vshll.u32 %v5245_v51, 16  ;;  %v2437_v5 = vshll.u32 %v5247_v54, 16  ;;  %v1597_v32 = vld [vmem:[#allocation2 + $0xf8] sm:$0x1f]  ;;  %v4370_v17 = vld [vmem:[#allocation9 + $0x80] sm:$0xff]  }
 0x225   : > { %2008 = vmatmul.mubr.bf16.gmra.mrb[24].mxu1 %v4356_v38  ;;  %3870 = vmatprep.subr.bf16.mxu0 %v4358_v13  ;;  %v2426_v39 = vor.u32 %v2425_v48, %v2421_v57  ;;  %v3526_v7 = vcombine.low %v1661_v49, %v1668_v18  ;;  %v1674_v10 = vrot.slane %v1672_v56, 1  ;;  %v1677_v27 = vshrl.u32 %v5237_v37, 16  ;;  %v4365_v12 = vld [vmem:[#allocation2 + $0xf0] ss:$16 sps:$4 sm:$0xff]  }
 0x226   : > { %3995 = vmatpush3.bf16.msra.mxu1 %v4354_v45  ;;  %2015 = vmatprep.mubr.bf16.mxu1 %v3534_v29  ;;  %v1681_v11 = vrot.slane %v1679_v50, 1  ;;  %v1684_v28 = vshrl.u32 %v5239_v41, 16  ;;  %v1688_v25 = vrot.slane %v1686_v58, 1  ;;  %v1691_v26 = vshrl.u32 %v5241_v42, 16  ;;  %v4369_v45 = vld [vmem:[#allocation9 + $0x1f8] sm:$0xff]  }
 0x227   : > { %2306 = vmatmul.mubr.bf16.gmra.mrb[24].mxu0 %v4357_v40  ;;  %3996 = vmatprep.subr.bf16.mxu1 %v4359_v33  ;;  %v1695_v35 = vrot.slane %v1693_v52, 1  ;;  %v1376_v62 = vld [vmem:[#allocation2 + $0xa0] sm:$0x1f]  ;;  %v1442_v15 = vshll.u32 %v5253_v1, 16  ;;  %v3597_v16 = vcombine.low %v2419_v3, %v2426_v39  ;;  %v2428_v20 = vshrl.u32 %v5245_v51, 16  ;;  %v4373_v40 = vld [vmem:[#allocation9 + $0x88] sm:$0xff]  }
 0x228   : > { %3871 = vmatpush3.bf16.msra.mxu0 %v4360_v46  ;;  %2313 = vmatprep.mubr.bf16.mxu0 %v3570_v21  ;;  %v2432_v22 = vrot.slane %v2430_v4, 1  ;;  %v2439_v23 = vrot.slane %v2437_v5, 1  ;;  %v1675_v24 = vor.u32 %v1674_v10, %v1670_v0  ;;  %v1682_v13 = vor.u32 %v1681_v11, %v1677_v27  ;;  %v2401_v46 = vld [vmem:[#allocation2 + $0x50] sm:$0x1f]  ;;  %v2402_v29 = vld [vmem:[#allocation2 + $0x60] sm:$0x1f] }
 0x229   : > { %3872 = vmatprep.subr.bf16.mxu0 %v4361_v34  ;;  %v1700_v14 = vshll.u32 %v1597_v32, 16  ;;  %v1689_v63 = vor.u32 %v1688_v25, %v1684_v28  ;;  %v1696_v30 = vor.u32 %v1695_v35, %v1691_v26  ;;  %v2435_v38 = vshrl.u32 %v5247_v54, 16  ;;  %v4372_v56 = vld [vmem:[#allocation2 + $0xa0] ss:$16 sps:$4 sm:$0xff]  }
 0x22a   : > { %3997 = vmatpush3.bf16.msra.mxu1 %v4359_v33  ;;  %v1707_v33 = vshll.u32 %v5257_v44, 16  ;;  %v1449_v59 = vshll.u32 %v1376_v62, 16  ;;  %v1698_v31 = vshrl.u32 %v1597_v32, 16  ;;  %v1440_v8 = vshrl.u32 %v5253_v1, 16  ;;  %v2403_v58 = vld [vmem:[#allocation2 + $0x70] sm:$0x1f] }
 0x22b   : > { %3998 = vmatprep.subr.bf16.mxu1 %v4362_v43  ;;  %v2433_v9 = vor.u32 %v2432_v22, %v2428_v20  ;;  %v2440_v34 = vor.u32 %v2439_v23, %v2435_v38  ;;  %v2444_v21 = vshll.u32 %v2401_v46, 16  ;;  %v2451_v36 = vshll.u32 %v2402_v29, 16  ;;  %v2404_v52 = vld [vmem:[#allocation2 + $0x80] sm:$0x1f]  ;;  %v4380_v20 = vld [vmem:[#allocation9 + $0xb0] sm:$0xff]  }
 0x22c   : > { %3873 = vmatpush3.bf16.msra.mxu0 %v4363_v19  ;;  %v3529_v37 = vcombine.low %v1675_v24, %v1682_v13  ;;  %v1702_v41 = vrot.slane %v1700_v14, 1  ;;  %v1705_v42 = vshrl.u32 %v5257_v44, 16  ;;  %v3532_v47 = vcombine.low %v1689_v63, %v1696_v30  ;;  %v4374_v19 = vld [vmem:[#allocation9 + $0x90] sm:$0xff]   ;;  %v4377_v28 = vld [vmem:[#allocation9 + $0xa0] sm:$0xff]  }
 0x22d   : > { %2016 = vmatmul.mubr.bf16.gmra.mrb[28].mxu1 %v4364_v6  ;;  %3874 = vmatprep.subr.bf16.mxu0 %v4366_v61  ;;  %v1444_v48 = vrot.slane %v1442_v15, 1  ;;  %v1447_v49 = vshrl.u32 %v1376_v62, 16  ;;  %v1451_v18 = vrot.slane %v1449_v59, 1  ;;  %v3600_v50 = vcombine.low %v2433_v9, %v2440_v34  ;;  %v4376_v6 = vld [vmem:[#allocation9 + $0x98] sm:$0xff]   ;;  %v4378_v62 = vld [vmem:[#allocation2 + $0xe0] ss:$16 sps:$4 sm:$0xff]  }
 0x22e   : > { %3999 = vmatpush3.bf16.msra.mxu1 %v4362_v43  ;;  %4002 = vmatprep.mubr.bf16.mxu1 %v3526_v7  ;;  %v1709_v43 = vrot.slane %v1707_v33, 1  ;;  %v2446_v51 = vrot.slane %v2444_v21, 1  ;;  %v2453_v54 = vrot.slane %v2451_v36, 1  ;;  %v1703_v55 = vor.u32 %v1702_v41, %v1698_v31  ;;  %v1380_v15 = vld [vmem:[#allocation2 + $0xe0] sm:$0x1f]  ;;  %v4382_v33 = vld [vmem:[#allocation9 + $0xb8] sm:$0xff]  }
 0x22f   : > { %2314 = vmatmul.mubr.bf16.gmra.mrb[28].mxu0 %v4365_v12  ;;  %4000 = vmatprep.subr.bf16.mxu1 %v4367_v2  ;;  %v1445_v61 = vor.u32 %v1444_v48, %v1440_v8  ;;  %v1452_v0 = vor.u32 %v1451_v18, %v1447_v49  ;;  %v2442_v1 = vshrl.u32 %v2401_v46, 16  ;;  %v2458_v4 = vshll.u32 %v2403_v58, 16  ;;  %v4379_v12 = vld [vmem:[#allocation9 + $0xa8] sm:$0xff]   ;;  %v1379_v23 = vld [vmem:[#allocation2 + $0xd0] sm:$0x1f] }
 0x230   : > { %3875 = vmatpush3.bf16.msra.mxu0 %v4368_v53  ;;  %2805 = vmatprep.mubr.bf16.mxu0 %v3597_v16  ;;  %v1710_v57 = vor.u32 %v1709_v43, %v1705_v42  ;;  %v2465_v5 = vshll.u32 %v2404_v52, 16  ;;  %v4375_v53 = vld [vmem:[#allocation2 + $0xc0] ss:$16 sps:$4 sm:$0xff]   ;;  %v2456_v25 = vshrl.u32 %v2403_v58, 16  ;;  %v2463_v26 = vshrl.u32 %v2404_v52, 16 }
 0x231   : > { %3876 = vmatprep.subr.bf16.mxu0 %v4369_v45  ;;  %v2447_v3 = vor.u32 %v2446_v51, %v2442_v1  ;;  %v3562_v7 = vcombine.low %v1445_v61, %v1452_v0  ;;  %v2460_v27 = vrot.slane %v2458_v4, 1  ;;  %v1378_v45 = vld [vmem:[#allocation2 + $0xc0] sm:$0x1f]  ;;  %v1477_v24 = vshll.u32 %v1380_v15, 16  ;;  %v2406_v9 = vld [vmem:[#allocation2 + $0xb0] sm:$0x1f] }
 0x232   : > { %4001 = vmatpush3.bf16.msra.mxu1 %v4367_v2  ;;  %v2449_v2 = vshrl.u32 %v2402_v29, 16  ;;  %v3535_v44 = vcombine.low %v1703_v55, %v1710_v57  ;;  %v2467_v11 = vrot.slane %v2465_v5, 1  ;;  %v1463_v22 = vshll.u32 %v1378_v45, 16  ;;  %v1382_v30 = vld [vmem:[#allocation2 + $0x100] sm:$0x1f] }
 0x233   : > { %4010 = vmatprep.subr.bf16.mxu1 %v4370_v17  ;;  %v2461_v35 = vor.u32 %v2460_v27, %v2456_v25  ;;  %v1470_v14 = vshll.u32 %v1379_v23, 16  ;;  %v1461_v46 = vshrl.u32 %v1378_v45, 16  ;;  %v1479_v63 = vrot.slane %v1477_v24, 1  ;;  %v2405_v38 = vld [vmem:[#allocation2 + $0xa0] sm:$0x1f]  ;;  %v4389_v25 = vld [vmem:[#allocation9 + $0x230] sm:$0xff]  }
 0x234   : > { %3877 = vmatpush3.bf16.msra.mxu0 %v4371_v60  ;;  %v2454_v39 = vor.u32 %v2453_v54, %v2449_v2  ;;  %v2468_v32 = vor.u32 %v2467_v11, %v2463_v26  ;;  %v1465_v29 = vrot.slane %v1463_v22, 1  ;;  %v1475_v60 = vshrl.u32 %v1380_v15, 16  ;;  %v4381_v59 = vld [vmem:[#allocation2 + $0x100] ss:$16 sps:$4 sm:$0xff]   ;;  %v4390_v45 = vld [vmem:[#allocation9 + $0x238] sm:$0xff]  }
 0x235   : > { %4003 = vmatmul.mubr.bf16.vlgmr.msra.gmra.mrb[32].mxu1 %v3529_v37  ;;  %v1468_v34 = vshrl.u32 %v1379_v23, 16  ;;  %v1472_v21 = vrot.slane %v1470_v14, 1  ;;  %v1381_v36 = vld [vmem:[#allocation2 + $0xf0] sm:$0x1f]  ;;  %v1491_v41 = vshll.u32 %v1382_v30, 16  ;;  %v2472_v43 = vshll.u32 %v2405_v38, 16 }
 0x236   : > { %4011 = vmatpush3.bf16.msra.mxu1 %v4370_v17  ;;  %4006 = vmatprep.mubr.bf16.mxu1 %v3532_v47  ;;  %v3603_v10 = vcombine.low %v2447_v3, %v2454_v39  ;;  %v3606_v16 = vcombine.low %v2461_v35, %v2468_v32  ;;  %v1377_v17 = vld [vmem:[#allocation2 + $0xb0] sm:$0x1f]  ;;  %v1466_v37 = vor.u32 %v1465_v29, %v1461_v46  ;;  %v2479_v47 = vshll.u32 %v2406_v9, 16  ;;  %v2409_v11 = vld [vmem:[#allocation2 + $0xe0] sm:$0x1f] }
 0x237   : > { %2806 = vmatmul.mubr.bf16.vlgmr.msra.gmra.mrb[32].mxu0 %v4372_v56  ;;  %4012 = vmatprep.subr.bf16.mxu1 %v4373_v40  ;;  %v1456_v13 = vshll.u32 %v1377_v17, 16  ;;  %v1454_v31 = vshrl.u32 %v1377_v17, 16  ;;  %v1480_v42 = vor.u32 %v1479_v63, %v1475_v60  ;;  %v1484_v49 = vshll.u32 %v1381_v36, 16  ;;  %v4385_v2 = vld [vmem:[#allocation9 + $0x210] sm:$0xff]   ;;  %v2411_v14 = vld [vmem:[#allocation2 + $0x100] sm:$0x1f] }
 0x238   : > { %2813 = vmatprep.mubr.bf16.mxu0 %v3600_v50  ;;  %v1473_v18 = vor.u32 %v1472_v21, %v1468_v34  ;;  %v4384_v50 = vld [vmem:[#allocation9 + $0x208] sm:$0xff]   ;;  %v1489_v51 = vshrl.u32 %v1382_v30, 16  ;;  %v1493_v54 = vrot.slane %v1491_v41, 1  ;;  %v2474_v57 = vrot.slane %v2472_v43, 1  ;;  %v2408_v27 = vld [vmem:[#allocation2 + $0xd0] sm:$0x1f] }
 0x239   : > { %v1458_v8 = vrot.slane %v1456_v13, 1  ;;  %v2477_v58 = vshrl.u32 %v2406_v9, 16  ;;  %v2481_v52 = vrot.slane %v2479_v47, 1  ;;  %v1482_v61 = vshrl.u32 %v1381_v36, 16  ;;  %v4392_v41 = vld [vmem:[#allocation11 + $0x8] sm:$0xff]   ;;  %v4394_v43 = vld [vmem:[#allocation11 + $0x18] sm:$0xff]  }
 0x23a   : > { %4013 = vmatpush3.bf16.msra.mxu1 %v4373_v40  ;;  %v4383_v40 = vld [vmem:[#allocation9 + $0x200] sm:$0xff]   ;;  %v3568_v55 = vcombine.low %v1473_v18, %v1480_v42  ;;  %v1486_v0 = vrot.slane %v1484_v49, 1  ;;  %v1494_v1 = vor.u32 %v1493_v54, %v1489_v51  ;;  %v2493_v35 = vshll.u32 %v2408_v27, 16  ;;  %v4393_v42 = vld [vmem:[#allocation11 + $0x10] sm:$0xff]   ;;  %v4398_v18 = vld [vmem:[#allocation11 + $0x38] sm:$0xff]  }
 0x23b   : > { %4014 = vmatprep.subr.bf16.mxu1 %v4374_v19  ;;  %v1459_v48 = vor.u32 %v1458_v8, %v1454_v31  ;;  %v2482_v39 = vor.u32 %v2481_v52, %v2477_v58  ;;  %v2500_v32 = vshll.u32 %v2409_v11, 16  ;;  %v2498_v22 = vshrl.u32 %v2409_v11, 16  ;;  %v4395_v47 = vld [vmem:[#allocation11 + $0x20] sm:$0xff]   ;;  %v4397_v49 = vld [vmem:[#allocation11 + $0x30] sm:$0xff]  }
 0x23c   : > { %v1487_v4 = vor.u32 %v1486_v0, %v1482_v61  ;;  %v2495_v17 = vrot.slane %v2493_v35, 1  ;;  %v2514_v29 = vshll.u32 %v2411_v14, 16 }
 0x23d   : > { %4007 = vmatmul.mubr.bf16.gmra.mrb[36].mxu1 %v3535_v44  ;;  %v3565_v56 = vcombine.low %v1459_v48, %v1466_v37  ;;  %v4386_v44 = vld [vmem:[#allocation9 + $0x218] sm:$0xff]   ;;  %v2502_v23 = vrot.slane %v2500_v32, 1  ;;  %v4396_v48 = vld [vmem:[#allocation11 + $0x28] sm:$0xff]  }
 0x23e   : > { %4015 = vmatpush3.bf16.msra.mxu1 %v4374_v19  ;;  %4026 = vmatprep.mubr.bf16.mxu1 %v3562_v7  ;;  %v2470_v19 = vshrl.u32 %v2405_v38, 16  ;;  %v3571_v5 = vcombine.low %v1487_v4, %v1494_v1  ;;  %v4387_v7 = vld [vmem:[#allocation9 + $0x220] sm:$0xff]   ;;  %v2512_v38 = vshrl.u32 %v2411_v14, 16  ;;  %v2516_v31 = vrot.slane %v2514_v29, 1 }
 0x23f   : > { %2814 = vmatmul.mubr.bf16.gmra.mrb[36].mxu0 %v4375_v53  ;;  %4016 = vmatprep.subr.bf16.mxu1 %v4376_v6  ;;  %v4388_v53 = vld [vmem:[#allocation9 + $0x228] sm:$0xff]   ;;  %v2503_v63 = vor.u32 %v2502_v23, %v2498_v22 }
 0x240   : > { %2821 = vmatprep.mubr.bf16.mxu0 %v3603_v10  ;;  %v2475_v3 = vor.u32 %v2474_v57, %v2470_v19  ;;  %v2407_v10 = vld [vmem:[#allocation2 + $0xc0] sm:$0x1f]  ;;  %v2517_v21 = vor.u32 %v2516_v31, %v2512_v38 }
 0x241   : > { %v2486_v26 = vshll.u32 %v2407_v10, 16 }
 0x242   : > { %4017 = vmatpush3.bf16.msra.mxu1 %v4376_v6  ;;  %v3598_v6 = vcombine.low %v2475_v3, %v2482_v39 }
 0x243   : > { %4018 = vmatprep.subr.bf16.mxu1 %v4377_v28  ;;  %v2488_v15 = vrot.slane %v2486_v26, 1 }
 0x246   : > { %4019 = vmatpush3.bf16.msra.mxu1 %v4377_v28  ;;  %v2410_v28 = vld [vmem:[#allocation2 + $0xf0] sm:$0x1f] }
 0x247   : > { %2822 = vmatmul.mubr.bf16.gmra.mrb[40].mxu0 %v4378_v62  ;;  %4020 = vmatprep.subr.bf16.mxu1 %v4379_v12  ;;  %v2484_v62 = vshrl.u32 %v2407_v10, 16  ;;  %v2505_v24 = vshrl.u32 %v2410_v28, 16 }
 0x248   : > { %2829 = vmatprep.mubr.bf16.mxu0 %v3606_v16  ;;  %v2491_v16 = vshrl.u32 %v2408_v27, 16 }
 0x24a   : > { %4021 = vmatpush3.bf16.msra.mxu1 %v4379_v12  ;;  %v2507_v12 = vshll.u32 %v2410_v28, 16  ;;  %v2496_v46 = vor.u32 %v2495_v17, %v2491_v16 }
 0x24b   : > { %4022 = vmatprep.subr.bf16.mxu1 %v4380_v20 }
 0x24c   : > { %v2509_v13 = vrot.slane %v2507_v12, 1 }
 0x24e   : > { %4023 = vmatpush3.bf16.msra.mxu1 %v4380_v20  ;;  %v2412_v20 = vld [vmem:[#allocation2 + $0x110] sm:$0x1f]  ;;  %v2510_v30 = vor.u32 %v2509_v13, %v2505_v24 }
 0x24f   : > { %2830 = vmatmul.mubr.bf16.gmra.mrb[44].mxu0 %v4381_v59  ;;  %4024 = vmatprep.subr.bf16.mxu1 %v4382_v33  ;;  %v2521_v60 = vshll.u32 %v2412_v20, 16  ;;  %v2519_v8 = vshrl.u32 %v2412_v20, 16 }
 0x250   : > { %v3604_v34 = vcombine.low %v2503_v63, %v2510_v30 }
 0x251   : > { %v2523_v9 = vrot.slane %v2521_v60, 1 }
 0x252   : > { %4025 = vmatpush3.bf16.msra.mxu1 %v4382_v33  ;;  %v2489_v33 = vor.u32 %v2488_v15, %v2484_v62 }
 0x253   : > { %4034 = vmatprep.subr.bf16.mxu1 %v4383_v40  ;;  %v2524_v36 = vor.u32 %v2523_v9, %v2519_v8 }
 0x254   : > { %v3601_v59 = vcombine.low %v2489_v33, %v2496_v46 }
 0x255   : > { %4027 = vmatmul.mubr.bf16.vlgmr.msra.gmra.mrb[32].mxu1 %v3565_v56  ;;  %v3607_v37 = vcombine.low %v2517_v21, %v2524_v36  ;;  %v5268_v56 = vld [vmem:[#allocation12] sm:$0xff]  }
 0x256   : > { %4030 = vmatprep.mubr.bf16.mxu1 %v3568_v55  ;;  %4035 = vmatpush3.bf16.msra.mxu1 %v4383_v40  ;;  %v4391_v40 = vld [vmem:[#allocation11] sm:$0xff]  }
 0x257   : > { %4036 = vmatprep.subr.bf16.mxu1 %v4384_v50  ;;  %4058 = vmatprep.subr.bf16.mxu0 %v4391_v40 }
 0x258   : > { %4059 = vmatpush3.bf16.msra.mxu0 %v4391_v40 }
 0x259   : > { %4060 = vmatprep.subr.bf16.mxu0 %v4392_v41 }
 0x25a   : > { %4037 = vmatpush3.bf16.msra.mxu1 %v4384_v50 }
 0x25b   : > { %4038 = vmatprep.subr.bf16.mxu1 %v4385_v2 }
 0x25c   : > { %4061 = vmatpush3.bf16.msra.mxu0 %v4392_v41 }
 0x25d   : > { %4031 = vmatmul.mubr.bf16.gmra.mrb[36].mxu1 %v3571_v5  ;;  %4062 = vmatprep.subr.bf16.mxu0 %v4393_v42 }
 0x25e   : > { %4039 = vmatpush3.bf16.msra.mxu1 %v4385_v2  ;;  %4050 = vmatprep.mubr.bf16.mxu1 %v3598_v6 }
 0x25f   : > { %4040 = vmatprep.subr.bf16.mxu1 %v4386_v44 }
 0x260   : > { %4063 = vmatpush3.bf16.msra.mxu0 %v4393_v42 }
 0x261   : > { %4064 = vmatprep.subr.bf16.mxu0 %v4394_v43 }
 0x262   : > { %4041 = vmatpush3.bf16.msra.mxu1 %v4386_v44 }
 0x263   : > { %4042 = vmatprep.subr.bf16.mxu1 %v4387_v7 }
 0x264   : > { %4065 = vmatpush3.bf16.msra.mxu0 %v4394_v43 }
 0x265   : > { %4066 = vmatprep.subr.bf16.mxu0 %v4395_v47 }
 0x266   : > { %4043 = vmatpush3.bf16.msra.mxu1 %v4387_v7 }
 0x267   : > { %4044 = vmatprep.subr.bf16.mxu1 %v4388_v53 }
 0x268   : > { %4067 = vmatpush3.bf16.msra.mxu0 %v4395_v47 }
 0x269   : > { %4068 = vmatprep.subr.bf16.mxu0 %v4396_v48 }
 0x26a   : > { %4045 = vmatpush3.bf16.msra.mxu1 %v4388_v53 }
 0x26b   : > { %4046 = vmatprep.subr.bf16.mxu1 %v4389_v25 }
 0x26c   : > { %4069 = vmatpush3.bf16.msra.mxu0 %v4396_v48 }
 0x26d   : > { %4070 = vmatprep.subr.bf16.mxu0 %v4397_v49 }
 0x26e   : > { %4047 = vmatpush3.bf16.msra.mxu1 %v4389_v25 }
 0x26f   : > { %4048 = vmatprep.subr.bf16.mxu1 %v4390_v45 }
 0x270   : > { %4071 = vmatpush3.bf16.msra.mxu0 %v4397_v49 }
 0x271   : > { %4072 = vmatprep.subr.bf16.mxu0 %v4398_v18 }
 0x272   : > { %4049 = vmatpush3.bf16.msra.mxu1 %v4390_v45 }
 0x274   : > { %4073 = vmatpush3.bf16.msra.mxu0 %v4398_v18 }
 0x275   : > { %4051 = vmatmul.mubr.bf16.vlgmr.msra.gmra.mrb[32].mxu1 %v3601_v59  ;;  %4082 = vmatprep.subr.bf16.mxu0 %v5268_v56 }
 0x276   : > { %4054 = vmatprep.mubr.bf16.mxu1 %v3604_v34 }
 0x27d   : > { %4055 = vmatmul.mubr.bf16.gmra.mrb[36].mxu1 %v3607_v37 }
 0x2e8   : > { %v3774_v50 = vpop.f32.mrb[16].mxu1 }
 0x2e9   : > { %v3775_v51 = vpop.f32.mrb[17].mxu1 }
 0x2ea   : > { %v3776_v54 = vadd.f32 %v3775_v51, %v3774_v50  ;;  %v3777_v19 = vpop.f32.mrb[18].mxu1  ;;  %v3826_v55 = vpop.f32.mrb[16].mxu0 }
 0x2eb   : > { %v3778_v57 = vpop.f32.mrb[19].mxu1  ;;  %v3827_v58 = vpop.f32.mrb[17].mxu0 }
 0x2ec   : > { %v3779_v52 = vadd.f32 %v3778_v57, %v3777_v19  ;;  %v3828_v61 = vadd.f32 %v3827_v58, %v3826_v55  ;;  %v3829_v0 = vpop.f32.mrb[18].mxu0 }
 0x2ed   : > { %v3830_v1 = vpop.f32.mrb[19].mxu0 }
 0x2ee   : > { %v4125_v2 = vadd.f32 %v3828_v61, %v3776_v54  ;;  %v3831_v3 = vadd.f32 %v3830_v1, %v3829_v0 }
 0x2f0   : > { %v4131_v39 = vadd.f32 %v3831_v3, %v3779_v52  ;;  %v3780_v4 = vpop.f32.mrb[20].mxu1 }
 0x2f1   : > { %v3781_v5 = vpop.f32.mrb[21].mxu1 }
 0x2f2   : > { %v3782_v44 = vadd.f32 %v3781_v5, %v3780_v4  ;;  %v3783_v6 = vpop.f32.mrb[22].mxu1  ;;  %v3832_v7 = vpop.f32.mrb[20].mxu0 }
 0x2f3   : > { %v3784_v53 = vpop.f32.mrb[23].mxu1  ;;  %v3833_v10 = vpop.f32.mrb[21].mxu0 }
 0x2f4   : > { %v3785_v27 = vadd.f32 %v3784_v53, %v3783_v6  ;;  %v3834_v11 = vadd.f32 %v3833_v10, %v3832_v7  ;;  %v3835_v28 = vpop.f32.mrb[22].mxu0 }
 0x2f5   : > { %v3836_v25 = vpop.f32.mrb[23].mxu0 }
 0x2f6   : > { %v4122_v26 = vadd.f32 %v3834_v11, %v3782_v44  ;;  %v3837_v35 = vadd.f32 %v3836_v25, %v3835_v28 }
 0x2f8   : > { %v4128_v32 = vadd.f32 %v3837_v35, %v3785_v27  ;;  %v3786_v12 = vpop.f32.mrb[24].mxu1 }
 0x2f9   : > { %v3787_v45 = vpop.f32.mrb[25].mxu1 }
 0x2fa   : > { %v3788_v62 = vadd.f32 %v3787_v45, %v3786_v12  ;;  %v3789_v15 = vpop.f32.mrb[26].mxu1  ;;  %v3838_v16 = vpop.f32.mrb[24].mxu0 }
 0x2fb   : > { %v3790_v17 = vpop.f32.mrb[27].mxu1  ;;  %v3839_v20 = vpop.f32.mrb[25].mxu0 }
 0x2fc   : > { %v3791_v22 = vadd.f32 %v3790_v17, %v3789_v15  ;;  %v3840_v23 = vadd.f32 %v3839_v20, %v3838_v16  ;;  %v3841_v24 = vpop.f32.mrb[26].mxu0 }
 0x2fd   : > { %v3842_v13 = vpop.f32.mrb[27].mxu0 }
 0x2fe   : > { %v4137_v14 = vadd.f32 %v3840_v23, %v3788_v62  ;;  %v3843_v33 = vadd.f32 %v3842_v13, %v3841_v24 }
 0x300   : > { %v4143_v46 = vadd.f32 %v3843_v33, %v3791_v22  ;;  %v3792_v29 = vpop.f32.mrb[28].mxu1 }
 0x301   : > { %v3793_v60 = vpop.f32.mrb[29].mxu1 }
 0x302   : > { %v3794_v63 = vadd.f32 %v3793_v60, %v3792_v29  ;;  %v3795_v30 = vpop.f32.mrb[30].mxu1  ;;  %v3844_v38 = vpop.f32.mrb[28].mxu0 }
 0x303   : > { %v3796_v59 = vpop.f32.mrb[31].mxu1  ;;  %v3845_v31 = vpop.f32.mrb[29].mxu0 }
 0x304   : > { %v3797_v8 = vadd.f32 %v3796_v59, %v3795_v30  ;;  %v3846_v9 = vadd.f32 %v3845_v31, %v3844_v38  ;;  %v3847_v34 = vpop.f32.mrb[30].mxu0 }
 0x305   : > { %v3848_v21 = vpop.f32.mrb[31].mxu0 }
 0x306   : > { %v4134_v36 = vadd.f32 %v3846_v9, %v3794_v63  ;;  %v3849_v37 = vadd.f32 %v3848_v21, %v3847_v34  ;;  %v4400_v21 = vld [vmem:[#allocation12 + $0x8] sm:$0xff]  }
 0x308   : > { %v4140_v40 = vadd.f32 %v3849_v37, %v3797_v8 }
 0x30a   : > { %v3878_v41 = vpop.f32.mrb[32].mxu0 }
 0x30b   : > { %v3879_v42 = vpop.f32.mrb[33].mxu0 }
 0x30c   : > { %v3880_v43 = vadd.f32 %v3879_v42, %v3878_v41  ;;  %v3881_v47 = vpop.f32.mrb[34].mxu0 }
 0x30d   : > { %v3882_v48 = vpop.f32.mrb[35].mxu0 }
 0x30e   : > { %v3883_v49 = vadd.f32 %v3882_v48, %v3881_v47  ;;  %v4126_v18 = vadd.f32 %v4125_v2, %v3880_v43  ;;  %v4401_v47 = vld [vmem:[#allocation12 + $0x10] sm:$0xff]  }
 0x310   : > { %v4132_v50 = vadd.f32 %v4131_v39, %v3883_v49 }
 0x312   : > { %v3884_v51 = vpop.f32.mrb[36].mxu0 }
 0x313   : > { %v3885_v54 = vpop.f32.mrb[37].mxu0 }
 0x314   : > { %v3886_v19 = vadd.f32 %v3885_v54, %v3884_v51  ;;  %v3887_v55 = vpop.f32.mrb[38].mxu0  ;;  %v4407_v51 = vld [vmem:[%s5020_s9] sm:$0xff]   ;;  %v4402_v54 = vld [vmem:[#allocation12 + $0x18] sm:$0xff]  }
 0x315   : > { %v3888_v57 = vpop.f32.mrb[39].mxu0 }
 0x316   : > { %v3889_v58 = vadd.f32 %v3888_v57, %v3887_v55  ;;  %v4123_v52 = vadd.f32 %v4122_v26, %v3886_v19  ;;  %v3632_v26 = vld [vmem:[%s5342_s5] ss:$0 sm:$0xff]  ;;  %v4404_v19 = vld [vmem:[#allocation12 + $0x28] sm:$0xff]   ;;  %v4405_v55 = vld [vmem:[#allocation12 + $0x30] sm:$0xff]  }
 0x317   : > { %v4406_v57 = vld [vmem:[#allocation12 + $0x38] sm:$0xff]  }
 0x318   : > { %v4129_v61 = vadd.f32 %v4128_v32, %v3889_v58  ;;  %v4408_v58 = vld [vmem:[%s5020_s9 + $0x8] sm:$0xff]  }
 0x31a   : > { %v3890_v0 = vpop.f32.mrb[40].mxu0 }
 0x31b   : > { %v3891_v1 = vpop.f32.mrb[41].mxu0 }
 0x31c   : > { %v3892_v3 = vadd.f32 %v3891_v1, %v3890_v0  ;;  %v3893_v4 = vpop.f32.mrb[42].mxu0  ;;  %v3633_v0 = vld [vmem:[%s5344_s7] ss:$0 sm:$0xff] }
 0x31d   : > { %v3894_v5 = vpop.f32.mrb[43].mxu0  ;;  %v3642_v1 = vld [vmem:[%s5391_s10] ss:$0 sm:$0xff] }
 0x31e   : > { %v3895_v44 = vadd.f32 %v3894_v5, %v3893_v4  ;;  %v4138_v6 = vadd.f32 %v4137_v14, %v3892_v3  ;;  %v4152_v3 = vadd.f32 %v3642_v1, %v3633_v0 }
 0x320   : > { %v4144_v7 = vadd.f32 %v4143_v46, %v3895_v44 }
 0x322   : > { %v3896_v53 = vpop.f32.mrb[44].mxu0 }
 0x323   : > { %v3897_v10 = vpop.f32.mrb[45].mxu0 }
 0x324   : > { %v3898_v2 = vadd.f32 %v3897_v10, %v3896_v53  ;;  %v3899_v39 = vpop.f32.mrb[46].mxu0 }
 0x325   : > { %v3900_v27 = vpop.f32.mrb[47].mxu0 }
 0x326   : > { %v3901_v11 = vadd.f32 %v3900_v27, %v3899_v39  ;;  %v4135_v28 = vadd.f32 %v4134_v36, %v3898_v2 }
 0x328   : > { %v4141_v25 = vadd.f32 %v4140_v40, %v3901_v11 }
 0x348   : > { %v4052_v35 = vpop.f32.mrb[32].mxu1 }
 0x349   : > { %v4124_v32 = vadd.f32 %v4123_v52, %v4052_v35  ;;  %v2872_v12 = vpop.f32.mrb[33].mxu1  ;;  %v4409_v52 = vld [vmem:[%s5020_s9 + $0x10] sm:$0xff]  }
 0x34a   : > { %v4127_v45 = vadd.f32 %v4126_v18, %v2872_v12  ;;  %v4053_v62 = vpop.f32.mrb[34].mxu1 }
 0x34b   : > { %v2920_v15 = vadd.f32 %v4124_v32, %v3632_v26  ;;  %v4130_v16 = vadd.f32 %v4129_v61, %v4053_v62  ;;  %v2875_v17 = vpop.f32.mrb[35].mxu1  ;;  %v4410_v61 = vld [vmem:[%s5020_s9 + $0x18] sm:$0xff]   ;;  %s4676_s9 = smov [#allocation14]  }
 0x34c   : > { %v2918_v20 = vadd.f32 %v4127_v45, %v3632_v26  ;;  %v4133_v22 = vadd.f32 %v4132_v50, %v2875_v17  ;;  %s4587_s19 = sshll.u32 %s4676_s9, 4  ;;  %s4588_s19 = int_to_ptr.vmem [resolvable:$false] %s4587_s19 }
 0x34d   : > { %v2921_v23 = vadd.f32 %v4130_v16, %v3632_v26  ;;  %v2928_v13 = vmax.f32 %v2920_v15, 0.0  ;;  %s4589_s27 = scalar_lea.vmem %s4588_s19, 1024  ;;  %p4590_p3 = scmp.lt.s32.totalorder %s5288_s24, %s4588_s19 }
 0x34e   : > { %v2919_v24 = vadd.f32 %v4133_v22, %v3632_v26  ;;  %v2926_v33 = vmax.f32 %v2918_v20, 0.0  ;;  %p4591_p5 = scmp.lt.s32.totalorder %s4589_s27, %s4583_s17 }
 0x34f   : > { %v2929_v14 = vmax.f32 %v2921_v23, 0.0 }
 0x350   : > { %v2927_v46 = vmax.f32 %v2919_v24, 0.0  ;;  %v4056_v29 = vpop.f32.mrb[36].mxu1  ;;  %p4592_p9 = por %p4591_p5, %p4590_p3 }
 0x351   : > { %v2935_v60 = vpack.c.bf16 %v2929_v14, %v2928_v13  ;;  %v4136_v63 = vadd.f32 %v4135_v28, %v4056_v29  ;;  %v2888_v30 = vpop.f32.mrb[37].mxu1 }
 0x352   : > { %v4139_v38 = vadd.f32 %v4138_v6, %v2888_v30  ;;  %v4057_v59 = vpop.f32.mrb[38].mxu1  ;;  %v2934_v31 = vpack.c.bf16 %v2927_v46, %v2926_v33  ;;  %p4593_p8 = pnand %p4592_p9, %p4586_p6 }
 0x353   : > { %v2924_v8 = vadd.f32 %v4136_v63, %v3632_v26  ;;  %v4142_v9 = vadd.f32 %v4141_v25, %v4057_v59  ;;  %v2891_v34 = vpop.f32.mrb[39].mxu1 }
 0x354   : > { %v2922_v36 = vadd.f32 %v4139_v38, %v3632_v26  ;;  %v4145_v37 = vadd.f32 %v4144_v7, %v2891_v34  ;;  %4074 = vmatprep.mubr.bf16.mxu0 %v2934_v31 }
 0x355   : > { %v2925_v40 = vadd.f32 %v4142_v9, %v3632_v26  ;;  %4075 = vmatmul.mubr.bf16.vlgmr.msra.gmra.mrb[48].mxu0 %v2935_v60  ;;  %v2932_v42 = vmax.f32 %v2924_v8, 0.0 }
 0x356   : > { %v2923_v41 = vadd.f32 %v4145_v37, %v3632_v26  ;;  %4083 = vmatpush3.bf16.msra.mxu0 %v5268_v56  ;;  %v2930_v48 = vmax.f32 %v2922_v36, 0.0  ;;  %v4403_v56 = vld [vmem:[#allocation12 + $0x20] sm:$0xff]  }
 0x357   : > { %v2933_v43 = vmax.f32 %v2925_v40, 0.0  ;;  %4084 = vmatprep.subr.bf16.mxu0 %v4400_v21 }
 0x358   : > { %v2931_v49 = vmax.f32 %v2923_v41, 0.0 }
 0x359   : > { %v2937_v18 = vpack.c.bf16 %v2933_v43, %v2932_v42 }
 0x35a   : > { %4085 = vmatpush3.bf16.msra.mxu0 %v4400_v21  ;;  %v2936_v50 = vpack.c.bf16 %v2931_v49, %v2930_v48 }
 0x35b   : > { %4086 = vmatprep.subr.bf16.mxu0 %v4401_v47 }
 0x35c   : > { %4078 = vmatprep.mubr.bf16.mxu0 %v2936_v50 }
 0x35d   : > { %4079 = vmatmul.mubr.bf16.gmra.mrb[52].mxu0 %v2937_v18 }
 0x35e   : > { %4087 = vmatpush3.bf16.msra.mxu0 %v4401_v47  ;;  %4098 = vmatprep.mubr.bf16.mxu0 %v4407_v51 }
 0x35f   : > { %4088 = vmatprep.subr.bf16.mxu0 %v4402_v54 }
 0x362   : > { %4089 = vmatpush3.bf16.msra.mxu0 %v4402_v54 }
 0x363   : > { %4090 = vmatprep.subr.bf16.mxu0 %v4403_v56 }
 0x366   : > { %4091 = vmatpush3.bf16.msra.mxu0 %v4403_v56 }
 0x367   : > { %4092 = vmatprep.subr.bf16.mxu0 %v4404_v19 }
 0x36a   : > { %4093 = vmatpush3.bf16.msra.mxu0 %v4404_v19 }
 0x36b   : > { %4094 = vmatprep.subr.bf16.mxu0 %v4405_v55 }
 0x36e   : > { %4095 = vmatpush3.bf16.msra.mxu0 %v4405_v55 }
 0x36f   : > { %4096 = vmatprep.subr.bf16.mxu0 %v4406_v57 }
 0x372   : > { %4097 = vmatpush3.bf16.msra.mxu0 %v4406_v57 }
 0x375   : > { %4099 = vmatmul.mubr.bf16.vlgmr.msra.gmra.mrb[48].mxu0 %v4408_v58 }
 0x376   : > { %4102 = vmatprep.mubr.bf16.mxu0 %v4409_v52 }
 0x37d   : > { %4103 = vmatmul.mubr.bf16.gmra.mrb[52].mxu0 %v4410_v61 }
 0x448   : > { %v4100_v4 = vpop.f32.mrb[48].mxu0 }
 0x449   : > { %v4146_v5 = vadd.f32 %v4100_v4, %v3633_v0  ;;  %v3211_v44 = vpop.f32.mrb[49].mxu0 }
 0x44a   : > { %v4148_v6 = vadd.f32 %v3633_v0, %v3211_v44  ;;  %v4101_v7 = vpop.f32.mrb[50].mxu0 }
 0x44b   : > { %v4147_v53 = vadd.f32 %v4146_v5, %v3642_v1  ;;  %v4151_v10 = vadd.f32 %v4152_v3, %v4101_v7  ;;  %v3214_v2 = vpop.f32.mrb[51].mxu0 }
 0x44c   : > { %v4149_v39 = vadd.f32 %v4148_v6, %v3642_v1  ;;  %v4153_v27 = vadd.f32 %v4152_v3, %v3214_v2 }
 0x44d   : > { %v3252_v11 = vmax.f32 %v4147_v53, 0.0  ;;  %v3253_v28 = vmax.f32 %v4151_v10, 0.0 }
 0x44e   : > { %v3250_v25 = vmax.f32 %v4149_v39, 0.0  ;;  %v3251_v35 = vmax.f32 %v4153_v27, 0.0 }
 0x44f   : > { %v3719_v26 = vpack.c.bf16 %v3253_v28, %v3252_v11 }
 0x450   : > { %v3714_v32 = vpack.c.bf16 %v3251_v35, %v3250_v25  ;;  %v4104_v12 = vpop.f32.mrb[52].mxu0 }
 0x451   : > { %3731 = vst [vmem:[%s475_s13 + $0x8] sm:$0xff] %v3719_v26   ;;  %v4155_v45 = vadd.f32 %v4152_v3, %v4104_v12  ;;  %v3227_v62 = vpop.f32.mrb[53].mxu0 }
 0x452   : > { %3715 = vst [vmem:[%s475_s13] sm:$0xff] %v3714_v32   ;;  %v4157_v15 = vadd.f32 %v4152_v3, %v3227_v62  ;;  %v4105_v16 = vpop.f32.mrb[54].mxu0 }
 0x453   : > { %v4159_v17 = vadd.f32 %v4152_v3, %v4105_v16  ;;  %v3230_v20 = vpop.f32.mrb[55].mxu0  ;;  %v3256_v23 = vmax.f32 %v4155_v45, 0.0 }
 0x454   : > { %v4161_v22 = vadd.f32 %v4152_v3, %v3230_v20  ;;  %v3254_v13 = vmax.f32 %v4157_v15, 0.0 }
 0x455   : > { %v3257_v24 = vmax.f32 %v4159_v17, 0.0 }
 0x456   : > { %v3255_v14 = vmax.f32 %v4161_v22, 0.0 }
 0x457   : > { %v3729_v33 = vpack.c.bf16 %v3257_v24, %v3256_v23 }
 0x458   : > { %v3724_v46 = vpack.c.bf16 %v3255_v14, %v3254_v13 }
 0x459   : > { %3733 = vst [vmem:[%s475_s13 + $0x18] sm:$0xff] %v3729_v33  }
 0x45a   : > { %3732 = vst [vmem:[%s475_s13 + $0x10] sm:$0xff] %v3724_v46  }
 0x45b   : > { %4596 = shalt.err (!%p4593_p8)
}
 0x45c   : > { %s4597_s29 = scalar_lea.hbm %s5293_s4, 512  ;;  %s4601_s26 = scalar_lea.hbm %s5392_s0, 1024 }
 0x45d   : > { %p4598_p11 = scmp.ne.s32.totalorder %s5293_s4, %s4597_s29  ;;  %p4602_p1 = scmp.lt.u32.totalorder %s5293_s4, %s5392_s0 }
 0x45e   : > { %p4603_p2 = scmp.lt.u32.totalorder %s4601_s26, %s4597_s29  ;;  %p4605_p0 = scmp.lt.u32.totalorder %s4597_s29, %s5293_s4 }
 0x45f   : > { %p4599_p7 = pnand %p4598_p11, %p4905_p10 }
 0x460   : > { %p4604_p13 = por %p4603_p2, %p4602_p1 }
 0x461   : > { %p4600_p12 = pneg %p4599_p7 }
 0x462   : > { %p4606_p4 = por %p4605_p0, %p4604_p13 }
 0x464   : > { %p4607_p6 = pnand %p4606_p4, %p4600_p12 }
 0x466   : > { %4610 = shalt.err (!%p4607_p6)
}
 0x467   : > { %s4677_s10 = smov 64   ;;  %s4678_s13 = smov 4  }
 0x468   : > { %4206 = dma.vmem_to_hbm [thread:$0]  (%p4905_p10), %s5288_s24, 512, %s5293_s4, %s3299_s21, %s4677_s10, %s4677_s10, %s4678_s13  }
 0x469 PF: > { %s5393_s11 = sld [smem:[#allocation21_spill]]  ;;  %s5394_s30 = sld [smem:[#allocation22_spill]] }
 0x46a   : > { %p5396_p5 = scmp.ge.s32.totalorder %s4665_s16, 2 }
 0x46f   : > { %s3327_s23 = sand.u32 1, %s5393_s11   ;;  %p5395_p3 = scmp.ne.s32.totalorder %s5394_s30, 0 }
 0x470   : > { %s3328_s17 = scalar_lea.sflag [#allocation5], %s3327_s23 }
 0x471   : > { %p4229_p9 = pnand %p5396_p5, %p5395_p3 }
 0x473   : > { %4648 = dma.done.wait (!%p4229_p9), %s3328_s17, 512  }
 0x474   : > { %4650 = vsyncadd (!%p4229_p9), %s3328_s17, 4294966784  ;;  %p28_p8 = scmp.ge.s32.totalorder %s4895_s22, 4   ;;  %s5397_s13 = smov %s4657_s14 }
 0x475   : > { %s5398_s14 = smov %s4661_s15  ;;  %s5399_s15 = smov %s4911_s12 }
 0x476   : > { %s5400_s16 = smov %s4895_s22  ;;  %30 = sbr.rel (!%p28_p8) target bundleno = 16 (0x10), region = 139 }
 0x47d   :  { %3333 = vsyncpa [#allocation4], 1 }
 0x47e   :  { %3335 = vsyncpa [#allocation4 + $0x1], 1 }
 0x47f   :  { %3336 = vsyncpa [#allocation7], 1 }
 0x480   :  { %3338 = vsyncpa [#allocation7 + $0x1], 1 }
 0x481   :  { %3339 = vsyncpa [#allocation10], 1 }
 0x482   :  { %3340 = vsyncpa [#allocation13], 1 }
 0x483   :  { %3341 = vsyncpa [#allocation5], 1 }
 0x484   :  { %3343 = vsyncpa [#allocation5 + $0x1], 1 }

</bundles_post_ra>
